<compile_context>
chip_gen: v6e
topology: v6e:2x2x1
jax: 0.10.0
libtpu: 0.0.40
codegen_flags: <defaults>
</compile_context>

<pallas_src>
import functools
import math

import numpy as np
import jax
import jax.numpy as jnp
from jax.experimental import pallas as pl
from jax.experimental.pallas import tpu as pltpu


# ----------------------------- Pallas kernel -------------------------------


def _make_kernel(dims, seq_len):
    """Build the autoencoder kernel.

    dims: tuple of (cin, cout) per conv layer (6 layers).
    seq_len: per-sample sequence length L (L % 8 == 0).
    Activations inside the kernel are (tile_n * L_s, C_s): time (all samples of the
    tile, contiguous per sample) on sublanes, channels on lanes.
    """
    L = seq_len

    def kernel(x_ref, w_ref, b_ref, o_ref, p1, p2, p3, u1, u2, u3):
        # p* : VMEM scratch used for the stride-2 maxpool reads.
        # u* : VMEM scratch used for the upsample even/odd interleave.

        # Per-trace cache of per-sample boundary masks; each resolution is reused
        # (L twice, L/2 and L/4 three times each).
        mask_cache = {}

        def time_masks(m, l_s):
            # first[i] = 1.0 iff row i is the first time step of its sample
            # last[i]  = 1.0 iff row i is the last  time step of its sample
            # Exact f32 integer arithmetic (m, l_s are tiny, << 2^24).
            key = (m, l_s)
            if key not in mask_cache:
                i = jax.lax.broadcasted_iota(jnp.int32, (m, 1), 0).astype(jnp.float32)
                lf = float(l_s)
                r = i - jnp.floor(i / lf) * lf
                first = jnp.where(r < 0.5, 1.0, 0.0)
                last = jnp.where(r > lf - 1.5, 1.0, 0.0)
                mask_cache[key] = (first, last)
            return mask_cache[key]

        def shifted(x, l_s):
            # x[t-1] and x[t+1], zeroed at per-sample boundaries (this is both the
            # conv zero-padding and the guard against cross-sample leakage of the
            # flattened (N*L, C) layout).
            m, c = x.shape
            first, last = time_masks(m, l_s)
            z = jnp.zeros((1, c), jnp.float32)
            xm1 = jnp.concatenate([z, x[:-1, :]], axis=0) * (1.0 - first)   # x[t-1]
            xp1 = jnp.concatenate([x[1:, :], z], axis=0) * (1.0 - last)     # x[t+1]
            return xm1, xp1, first, last

        def conv(x, li, l_s, apply_relu=True):
            # Conv1d(kernel_size=3, padding=1); x: (m, cin), m = tile_n * l_s.
            cin, cout = dims[li]
            xm1, xp1, _, _ = shifted(x, l_s)
            w0 = w_ref[li, 0, 0:cin, 0:cout]
            w1 = w_ref[li, 1, 0:cin, 0:cout]
            w2 = w_ref[li, 2, 0:cin, 0:cout]
            b = b_ref[li:li + 1, 0:cout]
            y = (jnp.dot(xm1, w0, preferred_element_type=jnp.float32)
                 + jnp.dot(x, w1, preferred_element_type=jnp.float32)
                 + jnp.dot(xp1, w2, preferred_element_type=jnp.float32)
                 + b)
            return jnp.maximum(y, 0.0) if apply_relu else y

        def maxpool2(h, scr):
            # MaxPool1d(kernel=2, stride=2): stride-2 sublane views of VMEM scratch.
            m = h.shape[0]
            scr[...] = h
            even = scr[pl.ds(0, m // 2, stride=2), :]
            odd = scr[pl.ds(1, m // 2, stride=2), :]
            return jnp.maximum(even, odd)

        def upsample2(x, l_s, scr):
            # nn.Upsample(scale_factor=2, mode='linear', align_corners=False):
            #   out[2j]   = 0.75*x[j] + 0.25*x[j-1]   (clamped at sample start)
            #   out[2j+1] = 0.75*x[j] + 0.25*x[j+1]   (clamped at sample end)
            m, c = x.shape
            xm1, xp1, first, last = shifted(x, l_s)
            left_c = xm1 + x * first      # x[j-1], clamped to x[j] at sample start
            right_c = xp1 + x * last      # x[j+1], clamped to x[j] at sample end
            scr[pl.ds(0, m, stride=2), :] = 0.75 * x + 0.25 * left_c    # even outputs
            scr[pl.ds(1, m, stride=2), :] = 0.75 * x + 0.25 * right_c   # odd outputs
            return scr[...]

        x = x_ref[...]

        # ----- encoder -----
        h = conv(x, 0, L)
        h = maxpool2(h, p1)
        h = conv(h, 1, L // 2)
        h = maxpool2(h, p2)
        h = conv(h, 2, L // 4)
        h = maxpool2(h, p3)

        # ----- decoder -----
        h = upsample2(h, L // 8, u1)
        h = conv(h, 3, L // 4)
        h = upsample2(h, L // 4, u2)
        h = conv(h, 4, L // 2)
        h = upsample2(h, L // 2, u3)
        h = conv(h, 5, L, apply_relu=False)
        o_ref[...] = jax.nn.sigmoid(h)

    return kernel


# ----------------------------- wrapper / glue -------------------------------


def init_params(key, input_channels: int):
    """Deterministic Conv1d parameters. Weight layout: (K=3, Cin, Cout); bias: (1, Cout)."""
    specs = [
        (input_channels, 16),
        (16, 8),
        (8, 4),
        (4, 8),
        (8, 16),
        (16, input_channels),
    ]
    params = []
    for cin, cout in specs:
        key, kw, kb = jax.random.split(key, 3)
        bound = 1.0 / math.sqrt(cin * 3)
        w = jax.random.uniform(kw, (3, cin, cout), jnp.float32, -bound, bound)
        b = jax.random.uniform(kb, (1, cout), jnp.float32, -bound, bound)
        params.extend([w, b])
    return params


@functools.partial(jax.jit, static_argnames=("seq_length",))
def timeseries_autoencoder(x_ncl, params, *, seq_length):
    """Forward pass. x_ncl: (N, C, L) float32 (PyTorch NCL). Returns (N, C, L)."""
    n, c_in, l = x_ncl.shape
    assert l == seq_length and l % 8 == 0, "seq_length must be divisible by 8 here"

    dims = ((c_in, 16), (16, 8), (8, 4), (4, 8), (8, 16), (16, c_in))

    # Pack the 12 tiny conv params into two operands (fewer DMAs / descriptors).
    ci_pad = max(ci for ci, _ in dims)
    co_pad = max(co for _, co in dims)
    w_list = params[0::2]
    b_list = params[1::2]
    w_all = jnp.stack([
        jnp.pad(w.astype(jnp.float32),
                ((0, 0), (0, ci_pad - ci), (0, co_pad - co)))
        for w, (ci, co) in zip(w_list, dims)
    ])                                                  # (6, 3, ci_pad, co_pad)
    b_all = jnp.stack([
        jnp.pad(b.astype(jnp.float32).reshape(-1), (0, co_pad - co))
        for b, (_, co) in zip(b_list, dims)
    ])                                                  # (6, co_pad)

    # Channels-last with batch flattened into the matmul M dimension: (N*L, C).
    # For input_channels == 1 this is a pure reshape (no transpose kernel).
    if c_in == 1:
        x2 = x_ncl.reshape(n * l, 1).astype(jnp.float32)
    else:
        x2 = jnp.transpose(x_ncl, (0, 2, 1)).reshape(n * l, c_in).astype(jnp.float32)

    # Batch tiling: ~1024 rows of the (N*L, C) slab per grid step (amortizes per-step
    # overhead; still tiny in VMEM), parallel over steps.
    rows_target = 1024
    tile_n = max(1, min(n, rows_target // l)) if l <= rows_target else 1
    while n % tile_n:
        tile_n -= 1
    m_tile = tile_n * l
    grid = (n // tile_n,)

    kernel = _make_kernel(dims, l)
    c1, c2, c3, c4, c5 = dims[0][1], dims[1][1], dims[2][1], dims[3][1], dims[4][1]

    out2 = pl.pallas_call(
        kernel,
        out_shape=jax.ShapeDtypeStruct((n * l, c_in), jnp.float32),
        grid_spec=pltpu.PrefetchScalarGridSpec(
            num_scalar_prefetch=0,
            grid=grid,
            in_specs=[
                pl.BlockSpec((m_tile, c_in), lambda i: (i, 0)),
                pl.BlockSpec((6, 3, ci_pad, co_pad), lambda i: (0, 0, 0, 0)),
                pl.BlockSpec((6, co_pad), lambda i: (0, 0)),
            ],
            out_specs=pl.BlockSpec((m_tile, c_in), lambda i: (i, 0)),
            scratch_shapes=[
                pltpu.VMEM((m_tile, c1), jnp.float32),        # maxpool 1
                pltpu.VMEM((m_tile // 2, c2), jnp.float32),   # maxpool 2
                pltpu.VMEM((m_tile // 4, c3), jnp.float32),   # maxpool 3
                pltpu.VMEM((m_tile // 4, c3), jnp.float32),   # upsample 1
                pltpu.VMEM((m_tile // 2, c4), jnp.float32),   # upsample 2
                pltpu.VMEM((m_tile, c5), jnp.float32),        # upsample 3
            ],
        ),
        compiler_params=pltpu.CompilerParams(
            dimension_semantics=("parallel",)),
    )(x2, w_all, b_all)

    out_nlc = out2.reshape(n, l, c_in)
    # For input_channels == 1 this transpose only moves a degenerate dim (XLA bitcast).
    return jnp.transpose(out_nlc, (0, 2, 1))


# --------------------------- pure-JAX reference ------------------------------


def _upsample_linear_matrix(in_size: int, out_size: int) -> np.ndarray:
    """PyTorch nn.Upsample(mode='linear', align_corners=False) as a matrix (Lout, Lin)."""
    m = np.zeros((out_size, in_size), dtype=np.float32)
    scale = in_size / out_size
    for j in range(out_size):
        src = scale * (j + 0.5) - 0.5
        if src < 0.0:
            src = 0.0
        i0 = min(int(math.floor(src)), in_size - 1)
        i1 = min(i0 + 1, in_size - 1)
        lam = src - i0
        m[j, i0] += 1.0 - lam
        m[j, i1] += lam
    return m


def _reference_forward(x_ncl, params):
    """Independent XLA reference mirroring the PyTorch module (no Pallas)."""
    hp = jax.lax.Precision.HIGHEST
    seq = x_ncl.shape[-1]

    def conv(h, w, b):  # w: (3, cin, cout), b: (1, cout)
        w_oik = jnp.transpose(w, (2, 1, 0))          # (Cout, Cin, K)
        y = jax.lax.conv_general_dilated(
            h, w_oik, window_strides=(1,), padding=((1, 1),),
            dimension_numbers=("NCH", "OIH", "NCH"), precision=hp)
        return y + b.reshape(1, -1, 1)

    def pool(h):
        return jnp.maximum(h[:, :, 0::2], h[:, :, 1::2])

    def up(h, out_size):
        l_in = h.shape[-1]
        u = jnp.asarray(_upsample_linear_matrix(l_in, out_size))
        return jnp.einsum("ji,nci->ncj", u, h, precision=hp)

    relu = jax.nn.relu
    h = pool(relu(conv(x_ncl, params[0], params[1])))
    h = pool(relu(conv(h, params[2], params[3])))
    h = pool(relu(conv(h, params[4], params[5])))
    h = relu(conv(up(h, 2 * h.shape[-1]), params[6], params[7]))
    h = relu(conv(up(h, 2 * h.shape[-1]), params[8], params[9]))
    h = conv(up(h, seq), params[10], params[11])     # nn.Upsample(size=seq_length)
    return jax.nn.sigmoid(h)


# ----------------------------------- main -----------------------------------

if __name__ == "__main__":
    key = jax.random.PRNGKey(0)
    batch, input_channels, seq_length = 2, 1, 32

    kx, kp = jax.random.split(key)
    x = jax.random.uniform(kx, (batch, input_channels, seq_length), jnp.float32)
    params = init_params(kp, input_channels)

    out = timeseries_autoencoder(x, params, seq_length=seq_length)
    out = jax.block_until_ready(out)

    assert out.shape == (batch, input_channels, seq_length), out.shape
    assert bool(jnp.all(jnp.isfinite(out)))
    assert bool(jnp.all((out >= 0.0) & (out <= 1.0)))  # sigmoid range

    ref = _reference_forward(x, params)
    max_err = float(jnp.max(jnp.abs(out - ref)))
    assert max_err < 2e-2, f"mismatch vs reference: {max_err}"

    print("KERNEL_OK")
</pallas_src>

<mosaic_0001>
module attributes {stable_mosaic.version = 11 : i64} {
  func.func @kernel(%arg0: i32, %arg1: memref<64x1xf32, #tpu.memory_space<vmem>>, %arg2: memref<6x3x16x16xf32, #tpu.memory_space<vmem>>, %arg3: memref<6x16xf32, #tpu.memory_space<vmem>>, %arg4: memref<64x1xf32, #tpu.memory_space<vmem>>, %arg5: memref<64x16xf32, #tpu.memory_space<vmem>>, %arg6: memref<32x8xf32, #tpu.memory_space<vmem>>, %arg7: memref<16x4xf32, #tpu.memory_space<vmem>>, %arg8: memref<16x4xf32, #tpu.memory_space<vmem>>, %arg9: memref<32x8xf32, #tpu.memory_space<vmem>>, %arg10: memref<64x16xf32, #tpu.memory_space<vmem>>) attributes {dimension_semantics = [#tpu.dimension_semantics<parallel>], iteration_bounds = array<i64: 1>, scalar_prefetch = 0 : i64, scratch_operands = 6 : i64, tpu.core_type = #tpu.core_type<tc>, window_params = [{transform_indices = @transform_0, window_bounds = array<i64: 64, 1>}, {pipeline_mode = #tpu.pipeline_mode<synchronous>, transform_indices = @transform_1, window_bounds = array<i64: 6, 3, 16, 16>}, {pipeline_mode = #tpu.pipeline_mode<synchronous>, transform_indices = @transform_2, window_bounds = array<i64: 6, 16>}, {transform_indices = @transform_3, window_bounds = array<i64: 64, 1>}]} {
    %c0 = arith.constant 0 : index
    %c0_0 = arith.constant 0 : index
    %0 = vector.load %arg1[%c0, %c0_0] : memref<64x1xf32, #tpu.memory_space<vmem>>, vector<64x1xf32>
    %1 = tpu.iota {dimensions = array<i32: 0>} : vector<64x1xi32>
    %2 = arith.sitofp %1 : vector<64x1xi32> to vector<64x1xf32>
    %cst = arith.constant 3.200000e+01 : f32
    %3 = vector.broadcast %cst : f32 to vector<64x1xf32>
    %4 = arith.divf %2, %3 : vector<64x1xf32>
    %5 = math.floor %4 : vector<64x1xf32>
    %cst_1 = arith.constant 3.200000e+01 : f32
    %6 = vector.broadcast %cst_1 : f32 to vector<64x1xf32>
    %7 = arith.mulf %5, %6 : vector<64x1xf32>
    %8 = arith.subf %2, %7 : vector<64x1xf32>
    %cst_2 = arith.constant 5.000000e-01 : f32
    %9 = vector.broadcast %cst_2 : f32 to vector<64x1xf32>
    %10 = arith.cmpf olt, %8, %9 : vector<64x1xf32>
    %cst_3 = arith.constant 1.000000e+00 : f32
    %cst_4 = arith.constant 0.000000e+00 : f32
    %11 = vector.broadcast %cst_3 : f32 to vector<64x1xf32>
    %12 = vector.broadcast %cst_4 : f32 to vector<64x1xf32>
    %13 = arith.select %10, %11, %12 : vector<64x1xi1>, vector<64x1xf32>
    %cst_5 = arith.constant 3.050000e+01 : f32
    %14 = vector.broadcast %cst_5 : f32 to vector<64x1xf32>
    %15 = arith.cmpf ogt, %8, %14 : vector<64x1xf32>
    %cst_6 = arith.constant 1.000000e+00 : f32
    %cst_7 = arith.constant 0.000000e+00 : f32
    %16 = vector.broadcast %cst_6 : f32 to vector<64x1xf32>
    %17 = vector.broadcast %cst_7 : f32 to vector<64x1xf32>
    %18 = arith.select %15, %16, %17 : vector<64x1xi1>, vector<64x1xf32>
    %cst_8 = arith.constant 0.000000e+00 : f32
    %19 = vector.broadcast %cst_8 : f32 to vector<1x1xf32>
    %20 = vector.extract_strided_slice %0 {offsets = [0, 0], sizes = [63, 1], strides = [1, 1]} : vector<64x1xf32> to vector<63x1xf32>
    %21 = tpu.concatenate %19, %20 in 0 : vector<1x1xf32>, vector<63x1xf32> -> vector<64x1xf32>
    %cst_9 = arith.constant 1.000000e+00 : f32
    %22 = vector.broadcast %cst_9 : f32 to vector<64x1xf32>
    %23 = arith.subf %22, %13 : vector<64x1xf32>
    %24 = arith.mulf %21, %23 : vector<64x1xf32>
    %25 = vector.extract_strided_slice %0 {offsets = [1, 0], sizes = [63, 1], strides = [1, 1]} : vector<64x1xf32> to vector<63x1xf32>
    %26 = tpu.concatenate %25, %19 in 0 : vector<63x1xf32>, vector<1x1xf32> -> vector<64x1xf32>
    %cst_10 = arith.constant 1.000000e+00 : f32
    %27 = vector.broadcast %cst_10 : f32 to vector<64x1xf32>
    %28 = arith.subf %27, %18 : vector<64x1xf32>
    %29 = arith.mulf %26, %28 : vector<64x1xf32>
    %c0_11 = arith.constant 0 : index
    %c0_12 = arith.constant 0 : index
    %c0_13 = arith.constant 0 : index
    %c0_14 = arith.constant 0 : index
    %30 = vector.load %arg2[%c0_11, %c0_12, %c0_13, %c0_14] : memref<6x3x16x16xf32, #tpu.memory_space<vmem>>, vector<1x1x1x16xf32>
    %31 = vector.shape_cast %30 : vector<1x1x1x16xf32> to vector<1x16xf32>
    %c0_15 = arith.constant 0 : index
    %c1 = arith.constant 1 : index
    %c0_16 = arith.constant 0 : index
    %c0_17 = arith.constant 0 : index
    %32 = vector.load %arg2[%c0_15, %c1, %c0_16, %c0_17] : memref<6x3x16x16xf32, #tpu.memory_space<vmem>>, vector<1x1x1x16xf32>
    %33 = vector.shape_cast %32 : vector<1x1x1x16xf32> to vector<1x16xf32>
    %c0_18 = arith.constant 0 : index
    %c2 = arith.constant 2 : index
    %c0_19 = arith.constant 0 : index
    %c0_20 = arith.constant 0 : index
    %34 = vector.load %arg2[%c0_18, %c2, %c0_19, %c0_20] : memref<6x3x16x16xf32, #tpu.memory_space<vmem>>, vector<1x1x1x16xf32>
    %35 = vector.shape_cast %34 : vector<1x1x1x16xf32> to vector<1x16xf32>
    %c0_21 = arith.constant 0 : index
    %c0_22 = arith.constant 0 : index
    %36 = vector.load %arg3[%c0_21, %c0_22] : memref<6x16xf32, #tpu.memory_space<vmem>>, vector<1x16xf32>
    %cst_23 = arith.constant dense<0.000000e+00> : vector<64x16xf32>
    %37 = tpu.matmul %24, %31, %cst_23 {dimension_numbers = #tpu.dot_dimension_numbers<[1], [0], [0], [1], [0, 0, 1, 1], [], []>} : vector<64x1xf32>, vector<1x16xf32>, vector<64x16xf32> -> vector<64x16xf32>
    %cst_24 = arith.constant dense<0.000000e+00> : vector<64x16xf32>
    %38 = tpu.matmul %0, %33, %cst_24 {dimension_numbers = #tpu.dot_dimension_numbers<[1], [0], [0], [1], [0, 0, 1, 1], [], []>} : vector<64x1xf32>, vector<1x16xf32>, vector<64x16xf32> -> vector<64x16xf32>
    %39 = arith.addf %37, %38 : vector<64x16xf32>
    %cst_25 = arith.constant dense<0.000000e+00> : vector<64x16xf32>
    %40 = tpu.matmul %29, %35, %cst_25 {dimension_numbers = #tpu.dot_dimension_numbers<[1], [0], [0], [1], [0, 0, 1, 1], [], []>} : vector<64x1xf32>, vector<1x16xf32>, vector<64x16xf32> -> vector<64x16xf32>
    %41 = arith.addf %39, %40 : vector<64x16xf32>
    %42 = vector.broadcast %36 : vector<1x16xf32> to vector<64x16xf32>
    %43 = arith.addf %41, %42 : vector<64x16xf32>
    %cst_26 = arith.constant 0.000000e+00 : f32
    %44 = vector.broadcast %cst_26 : f32 to vector<64x16xf32>
    %45 = arith.maximumf %43, %44 : vector<64x16xf32>
    %c0_27 = arith.constant 0 : index
    %c0_28 = arith.constant 0 : index
    %46 = vector.load %arg5[%c0_27, %c0_28] : memref<64x16xf32, #tpu.memory_space<vmem>>, vector<64x16xf32>
    tpu.vector_store %arg5[%c0_27, %c0_28], %45 {strides = array<i32>} : memref<64x16xf32, #tpu.memory_space<vmem>>, vector<64x16xf32>,
    %c0_29 = arith.constant 0 : index
    %c0_30 = arith.constant 0 : index
    %47 = tpu.strided_load %arg5[%c0_29, %c0_30] {strides = array<i32: 2, 1>} : memref<64x16xf32, #tpu.memory_space<vmem>>, vector<32x16xf32>
    %c1_31 = arith.constant 1 : index
    %c0_32 = arith.constant 0 : index
    %48 = tpu.strided_load %arg5[%c1_31, %c0_32] {strides = array<i32: 2, 1>} : memref<64x16xf32, #tpu.memory_space<vmem>>, vector<32x16xf32>
    %49 = arith.maximumf %47, %48 : vector<32x16xf32>
    %50 = tpu.iota {dimensions = array<i32: 0>} : vector<32x1xi32>
    %51 = arith.sitofp %50 : vector<32x1xi32> to vector<32x1xf32>
    %cst_33 = arith.constant 1.600000e+01 : f32
    %52 = vector.broadcast %cst_33 : f32 to vector<32x1xf32>
    %53 = arith.divf %51, %52 : vector<32x1xf32>
    %54 = math.floor %53 : vector<32x1xf32>
    %cst_34 = arith.constant 1.600000e+01 : f32
    %55 = vector.broadcast %cst_34 : f32 to vector<32x1xf32>
    %56 = arith.mulf %54, %55 : vector<32x1xf32>
    %57 = arith.subf %51, %56 : vector<32x1xf32>
    %cst_35 = arith.constant 5.000000e-01 : f32
    %58 = vector.broadcast %cst_35 : f32 to vector<32x1xf32>
    %59 = arith.cmpf olt, %57, %58 : vector<32x1xf32>
    %cst_36 = arith.constant 1.000000e+00 : f32
    %cst_37 = arith.constant 0.000000e+00 : f32
    %60 = vector.broadcast %cst_36 : f32 to vector<32x1xf32>
    %61 = vector.broadcast %cst_37 : f32 to vector<32x1xf32>
    %62 = arith.select %59, %60, %61 : vector<32x1xi1>, vector<32x1xf32>
    %cst_38 = arith.constant 1.450000e+01 : f32
    %63 = vector.broadcast %cst_38 : f32 to vector<32x1xf32>
    %64 = arith.cmpf ogt, %57, %63 : vector<32x1xf32>
    %cst_39 = arith.constant 1.000000e+00 : f32
    %cst_40 = arith.constant 0.000000e+00 : f32
    %65 = vector.broadcast %cst_39 : f32 to vector<32x1xf32>
    %66 = vector.broadcast %cst_40 : f32 to vector<32x1xf32>
    %67 = arith.select %64, %65, %66 : vector<32x1xi1>, vector<32x1xf32>
    %cst_41 = arith.constant 0.000000e+00 : f32
    %68 = vector.broadcast %cst_41 : f32 to vector<1x16xf32>
    %69 = vector.extract_strided_slice %49 {offsets = [0, 0], sizes = [31, 16], strides = [1, 1]} : vector<32x16xf32> to vector<31x16xf32>
    %70 = tpu.concatenate %68, %69 in 0 : vector<1x16xf32>, vector<31x16xf32> -> vector<32x16xf32>
    %cst_42 = arith.constant 1.000000e+00 : f32
    %71 = vector.broadcast %cst_42 : f32 to vector<32x1xf32>
    %72 = arith.subf %71, %62 : vector<32x1xf32>
    %73 = vector.broadcast %72 : vector<32x1xf32> to vector<32x16xf32>
    %74 = arith.mulf %70, %73 : vector<32x16xf32>
    %75 = vector.extract_strided_slice %49 {offsets = [1, 0], sizes = [31, 16], strides = [1, 1]} : vector<32x16xf32> to vector<31x16xf32>
    %76 = tpu.concatenate %75, %68 in 0 : vector<31x16xf32>, vector<1x16xf32> -> vector<32x16xf32>
    %cst_43 = arith.constant 1.000000e+00 : f32
    %77 = vector.broadcast %cst_43 : f32 to vector<32x1xf32>
    %78 = arith.subf %77, %67 : vector<32x1xf32>
    %79 = vector.broadcast %78 : vector<32x1xf32> to vector<32x16xf32>
    %80 = arith.mulf %76, %79 : vector<32x16xf32>
    %c1_44 = arith.constant 1 : index
    %c0_45 = arith.constant 0 : index
    %c0_46 = arith.constant 0 : index
    %c0_47 = arith.constant 0 : index
    %81 = vector.load %arg2[%c1_44, %c0_45, %c0_46, %c0_47] : memref<6x3x16x16xf32, #tpu.memory_space<vmem>>, vector<1x1x16x8xf32>
    %82 = vector.shape_cast %81 : vector<1x1x16x8xf32> to vector<16x8xf32>
    %c1_48 = arith.constant 1 : index
    %c1_49 = arith.constant 1 : index
    %c0_50 = arith.constant 0 : index
    %c0_51 = arith.constant 0 : index
    %83 = vector.load %arg2[%c1_48, %c1_49, %c0_50, %c0_51] : memref<6x3x16x16xf32, #tpu.memory_space<vmem>>, vector<1x1x16x8xf32>
    %84 = vector.shape_cast %83 : vector<1x1x16x8xf32> to vector<16x8xf32>
    %c1_52 = arith.constant 1 : index
    %c2_53 = arith.constant 2 : index
    %c0_54 = arith.constant 0 : index
    %c0_55 = arith.constant 0 : index
    %85 = vector.load %arg2[%c1_52, %c2_53, %c0_54, %c0_55] : memref<6x3x16x16xf32, #tpu.memory_space<vmem>>, vector<1x1x16x8xf32>
    %86 = vector.shape_cast %85 : vector<1x1x16x8xf32> to vector<16x8xf32>
    %c1_56 = arith.constant 1 : index
    %c0_57 = arith.constant 0 : index
    %87 = vector.load %arg3[%c1_56, %c0_57] : memref<6x16xf32, #tpu.memory_space<vmem>>, vector<1x8xf32>
    %cst_58 = arith.constant dense<0.000000e+00> : vector<32x8xf32>
    %88 = tpu.matmul %74, %82, %cst_58 {dimension_numbers = #tpu.dot_dimension_numbers<[1], [0], [0], [1], [0, 0, 1, 1], [], []>} : vector<32x16xf32>, vector<16x8xf32>, vector<32x8xf32> -> vector<32x8xf32>
    %cst_59 = arith.constant dense<0.000000e+00> : vector<32x8xf32>
    %89 = tpu.matmul %49, %84, %cst_59 {dimension_numbers = #tpu.dot_dimension_numbers<[1], [0], [0], [1], [0, 0, 1, 1], [], []>} : vector<32x16xf32>, vector<16x8xf32>, vector<32x8xf32> -> vector<32x8xf32>
    %90 = arith.addf %88, %89 : vector<32x8xf32>
    %cst_60 = arith.constant dense<0.000000e+00> : vector<32x8xf32>
    %91 = tpu.matmul %80, %86, %cst_60 {dimension_numbers = #tpu.dot_dimension_numbers<[1], [0], [0], [1], [0, 0, 1, 1], [], []>} : vector<32x16xf32>, vector<16x8xf32>, vector<32x8xf32> -> vector<32x8xf32>
    %92 = arith.addf %90, %91 : vector<32x8xf32>
    %93 = vector.broadcast %87 : vector<1x8xf32> to vector<32x8xf32>
    %94 = arith.addf %92, %93 : vector<32x8xf32>
    %cst_61 = arith.constant 0.000000e+00 : f32
    %95 = vector.broadcast %cst_61 : f32 to vector<32x8xf32>
    %96 = arith.maximumf %94, %95 : vector<32x8xf32>
    %c0_62 = arith.constant 0 : index
    %c0_63 = arith.constant 0 : index
    %97 = vector.load %arg6[%c0_62, %c0_63] : memref<32x8xf32, #tpu.memory_space<vmem>>, vector<32x8xf32>
    tpu.vector_store %arg6[%c0_62, %c0_63], %96 {strides = array<i32>} : memref<32x8xf32, #tpu.memory_space<vmem>>, vector<32x8xf32>,
    %c0_64 = arith.constant 0 : index
    %c0_65 = arith.constant 0 : index
    %98 = tpu.strided_load %arg6[%c0_64, %c0_65] {strides = array<i32: 2, 1>} : memref<32x8xf32, #tpu.memory_space<vmem>>, vector<16x8xf32>
    %c1_66 = arith.constant 1 : index
    %c0_67 = arith.constant 0 : index
    %99 = tpu.strided_load %arg6[%c1_66, %c0_67] {strides = array<i32: 2, 1>} : memref<32x8xf32, #tpu.memory_space<vmem>>, vector<16x8xf32>
    %100 = arith.maximumf %98, %99 : vector<16x8xf32>
    %101 = tpu.iota {dimensions = array<i32: 0>} : vector<16x1xi32>
    %102 = arith.sitofp %101 : vector<16x1xi32> to vector<16x1xf32>
    %cst_68 = arith.constant 8.000000e+00 : f32
    %103 = vector.broadcast %cst_68 : f32 to vector<16x1xf32>
    %104 = arith.divf %102, %103 : vector<16x1xf32>
    %105 = math.floor %104 : vector<16x1xf32>
    %cst_69 = arith.constant 8.000000e+00 : f32
    %106 = vector.broadcast %cst_69 : f32 to vector<16x1xf32>
    %107 = arith.mulf %105, %106 : vector<16x1xf32>
    %108 = arith.subf %102, %107 : vector<16x1xf32>
    %cst_70 = arith.constant 5.000000e-01 : f32
    %109 = vector.broadcast %cst_70 : f32 to vector<16x1xf32>
    %110 = arith.cmpf olt, %108, %109 : vector<16x1xf32>
    %cst_71 = arith.constant 1.000000e+00 : f32
    %cst_72 = arith.constant 0.000000e+00 : f32
    %111 = vector.broadcast %cst_71 : f32 to vector<16x1xf32>
    %112 = vector.broadcast %cst_72 : f32 to vector<16x1xf32>
    %113 = arith.select %110, %111, %112 : vector<16x1xi1>, vector<16x1xf32>
    %cst_73 = arith.constant 6.500000e+00 : f32
    %114 = vector.broadcast %cst_73 : f32 to vector<16x1xf32>
    %115 = arith.cmpf ogt, %108, %114 : vector<16x1xf32>
    %cst_74 = arith.constant 1.000000e+00 : f32
    %cst_75 = arith.constant 0.000000e+00 : f32
    %116 = vector.broadcast %cst_74 : f32 to vector<16x1xf32>
    %117 = vector.broadcast %cst_75 : f32 to vector<16x1xf32>
    %118 = arith.select %115, %116, %117 : vector<16x1xi1>, vector<16x1xf32>
    %cst_76 = arith.constant 0.000000e+00 : f32
    %119 = vector.broadcast %cst_76 : f32 to vector<1x8xf32>
    %120 = vector.extract_strided_slice %100 {offsets = [0, 0], sizes = [15, 8], strides = [1, 1]} : vector<16x8xf32> to vector<15x8xf32>
    %121 = tpu.concatenate %119, %120 in 0 : vector<1x8xf32>, vector<15x8xf32> -> vector<16x8xf32>
    %cst_77 = arith.constant 1.000000e+00 : f32
    %122 = vector.broadcast %cst_77 : f32 to vector<16x1xf32>
    %123 = arith.subf %122, %113 : vector<16x1xf32>
    %124 = vector.broadcast %123 : vector<16x1xf32> to vector<16x8xf32>
    %125 = arith.mulf %121, %124 : vector<16x8xf32>
    %126 = vector.extract_strided_slice %100 {offsets = [1, 0], sizes = [15, 8], strides = [1, 1]} : vector<16x8xf32> to vector<15x8xf32>
    %127 = tpu.concatenate %126, %119 in 0 : vector<15x8xf32>, vector<1x8xf32> -> vector<16x8xf32>
    %cst_78 = arith.constant 1.000000e+00 : f32
    %128 = vector.broadcast %cst_78 : f32 to vector<16x1xf32>
    %129 = arith.subf %128, %118 : vector<16x1xf32>
    %130 = vector.broadcast %129 : vector<16x1xf32> to vector<16x8xf32>
    %131 = arith.mulf %127, %130 : vector<16x8xf32>
    %c2_79 = arith.constant 2 : index
    %c0_80 = arith.constant 0 : index
    %c0_81 = arith.constant 0 : index
    %c0_82 = arith.constant 0 : index
    %132 = vector.load %arg2[%c2_79, %c0_80, %c0_81, %c0_82] : memref<6x3x16x16xf32, #tpu.memory_space<vmem>>, vector<1x1x8x4xf32>
    %133 = vector.shape_cast %132 : vector<1x1x8x4xf32> to vector<8x4xf32>
    %c2_83 = arith.constant 2 : index
    %c1_84 = arith.constant 1 : index
    %c0_85 = arith.constant 0 : index
    %c0_86 = arith.constant 0 : index
    %134 = vector.load %arg2[%c2_83, %c1_84, %c0_85, %c0_86] : memref<6x3x16x16xf32, #tpu.memory_space<vmem>>, vector<1x1x8x4xf32>
    %135 = vector.shape_cast %134 : vector<1x1x8x4xf32> to vector<8x4xf32>
    %c2_87 = arith.constant 2 : index
    %c2_88 = arith.constant 2 : index
    %c0_89 = arith.constant 0 : index
    %c0_90 = arith.constant 0 : index
    %136 = vector.load %arg2[%c2_87, %c2_88, %c0_89, %c0_90] : memref<6x3x16x16xf32, #tpu.memory_space<vmem>>, vector<1x1x8x4xf32>
    %137 = vector.shape_cast %136 : vector<1x1x8x4xf32> to vector<8x4xf32>
    %c2_91 = arith.constant 2 : index
    %c0_92 = arith.constant 0 : index
    %138 = vector.load %arg3[%c2_91, %c0_92] : memref<6x16xf32, #tpu.memory_space<vmem>>, vector<1x4xf32>
    %cst_93 = arith.constant dense<0.000000e+00> : vector<16x4xf32>
    %139 = tpu.matmul %125, %133, %cst_93 {dimension_numbers = #tpu.dot_dimension_numbers<[1], [0], [0], [1], [0, 0, 1, 1], [], []>} : vector<16x8xf32>, vector<8x4xf32>, vector<16x4xf32> -> vector<16x4xf32>
    %cst_94 = arith.constant dense<0.000000e+00> : vector<16x4xf32>
    %140 = tpu.matmul %100, %135, %cst_94 {dimension_numbers = #tpu.dot_dimension_numbers<[1], [0], [0], [1], [0, 0, 1, 1], [], []>} : vector<16x8xf32>, vector<8x4xf32>, vector<16x4xf32> -> vector<16x4xf32>
    %141 = arith.addf %139, %140 : vector<16x4xf32>
    %cst_95 = arith.constant dense<0.000000e+00> : vector<16x4xf32>
    %142 = tpu.matmul %131, %137, %cst_95 {dimension_numbers = #tpu.dot_dimension_numbers<[1], [0], [0], [1], [0, 0, 1, 1], [], []>} : vector<16x8xf32>, vector<8x4xf32>, vector<16x4xf32> -> vector<16x4xf32>
    %143 = arith.addf %141, %142 : vector<16x4xf32>
    %144 = vector.broadcast %138 : vector<1x4xf32> to vector<16x4xf32>
    %145 = arith.addf %143, %144 : vector<16x4xf32>
    %cst_96 = arith.constant 0.000000e+00 : f32
    %146 = vector.broadcast %cst_96 : f32 to vector<16x4xf32>
    %147 = arith.maximumf %145, %146 : vector<16x4xf32>
    %c0_97 = arith.constant 0 : index
    %c0_98 = arith.constant 0 : index
    %148 = vector.load %arg7[%c0_97, %c0_98] : memref<16x4xf32, #tpu.memory_space<vmem>>, vector<16x4xf32>
    tpu.vector_store %arg7[%c0_97, %c0_98], %147 {strides = array<i32>} : memref<16x4xf32, #tpu.memory_space<vmem>>, vector<16x4xf32>,
    %c0_99 = arith.constant 0 : index
    %c0_100 = arith.constant 0 : index
    %149 = tpu.strided_load %arg7[%c0_99, %c0_100] {strides = array<i32: 2, 1>} : memref<16x4xf32, #tpu.memory_space<vmem>>, vector<8x4xf32>
    %c1_101 = arith.constant 1 : index
    %c0_102 = arith.constant 0 : index
    %150 = tpu.strided_load %arg7[%c1_101, %c0_102] {strides = array<i32: 2, 1>} : memref<16x4xf32, #tpu.memory_space<vmem>>, vector<8x4xf32>
    %151 = arith.maximumf %149, %150 : vector<8x4xf32>
    %152 = tpu.iota {dimensions = array<i32: 0>} : vector<8x1xi32>
    %153 = arith.sitofp %152 : vector<8x1xi32> to vector<8x1xf32>
    %cst_103 = arith.constant 4.000000e+00 : f32
    %154 = vector.broadcast %cst_103 : f32 to vector<8x1xf32>
    %155 = arith.divf %153, %154 : vector<8x1xf32>
    %156 = math.floor %155 : vector<8x1xf32>
    %cst_104 = arith.constant 4.000000e+00 : f32
    %157 = vector.broadcast %cst_104 : f32 to vector<8x1xf32>
    %158 = arith.mulf %156, %157 : vector<8x1xf32>
    %159 = arith.subf %153, %158 : vector<8x1xf32>
    %cst_105 = arith.constant 5.000000e-01 : f32
    %160 = vector.broadcast %cst_105 : f32 to vector<8x1xf32>
    %161 = arith.cmpf olt, %159, %160 : vector<8x1xf32>
    %cst_106 = arith.constant 1.000000e+00 : f32
    %cst_107 = arith.constant 0.000000e+00 : f32
    %162 = vector.broadcast %cst_106 : f32 to vector<8x1xf32>
    %163 = vector.broadcast %cst_107 : f32 to vector<8x1xf32>
    %164 = arith.select %161, %162, %163 : vector<8x1xi1>, vector<8x1xf32>
    %cst_108 = arith.constant 2.500000e+00 : f32
    %165 = vector.broadcast %cst_108 : f32 to vector<8x1xf32>
    %166 = arith.cmpf ogt, %159, %165 : vector<8x1xf32>
    %cst_109 = arith.constant 1.000000e+00 : f32
    %cst_110 = arith.constant 0.000000e+00 : f32
    %167 = vector.broadcast %cst_109 : f32 to vector<8x1xf32>
    %168 = vector.broadcast %cst_110 : f32 to vector<8x1xf32>
    %169 = arith.select %166, %167, %168 : vector<8x1xi1>, vector<8x1xf32>
    %cst_111 = arith.constant 0.000000e+00 : f32
    %170 = vector.broadcast %cst_111 : f32 to vector<1x4xf32>
    %171 = vector.extract_strided_slice %151 {offsets = [0, 0], sizes = [7, 4], strides = [1, 1]} : vector<8x4xf32> to vector<7x4xf32>
    %172 = tpu.concatenate %170, %171 in 0 : vector<1x4xf32>, vector<7x4xf32> -> vector<8x4xf32>
    %cst_112 = arith.constant 1.000000e+00 : f32
    %173 = vector.broadcast %cst_112 : f32 to vector<8x1xf32>
    %174 = arith.subf %173, %164 : vector<8x1xf32>
    %175 = vector.broadcast %174 : vector<8x1xf32> to vector<8x4xf32>
    %176 = arith.mulf %172, %175 : vector<8x4xf32>
    %177 = vector.extract_strided_slice %151 {offsets = [1, 0], sizes = [7, 4], strides = [1, 1]} : vector<8x4xf32> to vector<7x4xf32>
    %178 = tpu.concatenate %177, %170 in 0 : vector<7x4xf32>, vector<1x4xf32> -> vector<8x4xf32>
    %cst_113 = arith.constant 1.000000e+00 : f32
    %179 = vector.broadcast %cst_113 : f32 to vector<8x1xf32>
    %180 = arith.subf %179, %169 : vector<8x1xf32>
    %181 = vector.broadcast %180 : vector<8x1xf32> to vector<8x4xf32>
    %182 = arith.mulf %178, %181 : vector<8x4xf32>
    %183 = vector.broadcast %164 : vector<8x1xf32> to vector<8x4xf32>
    %184 = arith.mulf %151, %183 : vector<8x4xf32>
    %185 = arith.addf %176, %184 : vector<8x4xf32>
    %186 = vector.broadcast %169 : vector<8x1xf32> to vector<8x4xf32>
    %187 = arith.mulf %151, %186 : vector<8x4xf32>
    %188 = arith.addf %182, %187 : vector<8x4xf32>
    %cst_114 = arith.constant 7.500000e-01 : f32
    %189 = vector.broadcast %cst_114 : f32 to vector<8x4xf32>
    %190 = arith.mulf %189, %151 : vector<8x4xf32>
    %cst_115 = arith.constant 2.500000e-01 : f32
    %191 = vector.broadcast %cst_115 : f32 to vector<8x4xf32>
    %192 = arith.mulf %191, %185 : vector<8x4xf32>
    %193 = arith.addf %190, %192 : vector<8x4xf32>
    %c0_116 = arith.constant 0 : index
    %c0_117 = arith.constant 0 : index
    %194 = tpu.strided_load %arg8[%c0_116, %c0_117] {strides = array<i32: 2, 1>} : memref<16x4xf32, #tpu.memory_space<vmem>>, vector<8x4xf32>
    tpu.strided_store %arg8[%c0_116, %c0_117], %193 {strides = array<i32: 2, 1>} : memref<16x4xf32, #tpu.memory_space<vmem>>, vector<8x4xf32>
    %cst_118 = arith.constant 7.500000e-01 : f32
    %195 = vector.broadcast %cst_118 : f32 to vector<8x4xf32>
    %196 = arith.mulf %195, %151 : vector<8x4xf32>
    %cst_119 = arith.constant 2.500000e-01 : f32
    %197 = vector.broadcast %cst_119 : f32 to vector<8x4xf32>
    %198 = arith.mulf %197, %188 : vector<8x4xf32>
    %199 = arith.addf %196, %198 : vector<8x4xf32>
    %c1_120 = arith.constant 1 : index
    %c0_121 = arith.constant 0 : index
    %200 = tpu.strided_load %arg8[%c1_120, %c0_121] {strides = array<i32: 2, 1>} : memref<16x4xf32, #tpu.memory_space<vmem>>, vector<8x4xf32>
    tpu.strided_store %arg8[%c1_120, %c0_121], %199 {strides = array<i32: 2, 1>} : memref<16x4xf32, #tpu.memory_space<vmem>>, vector<8x4xf32>
    %c0_122 = arith.constant 0 : index
    %c0_123 = arith.constant 0 : index
    %201 = vector.load %arg8[%c0_122, %c0_123] : memref<16x4xf32, #tpu.memory_space<vmem>>, vector<16x4xf32>
    %cst_124 = arith.constant 0.000000e+00 : f32
    %202 = vector.broadcast %cst_124 : f32 to vector<1x4xf32>
    %203 = vector.extract_strided_slice %201 {offsets = [0, 0], sizes = [15, 4], strides = [1, 1]} : vector<16x4xf32> to vector<15x4xf32>
    %204 = tpu.concatenate %202, %203 in 0 : vector<1x4xf32>, vector<15x4xf32> -> vector<16x4xf32>
    %cst_125 = arith.constant 1.000000e+00 : f32
    %205 = vector.broadcast %cst_125 : f32 to vector<16x1xf32>
    %206 = arith.subf %205, %113 : vector<16x1xf32>
    %207 = vector.broadcast %206 : vector<16x1xf32> to vector<16x4xf32>
    %208 = arith.mulf %204, %207 : vector<16x4xf32>
    %209 = vector.extract_strided_slice %201 {offsets = [1, 0], sizes = [15, 4], strides = [1, 1]} : vector<16x4xf32> to vector<15x4xf32>
    %210 = tpu.concatenate %209, %202 in 0 : vector<15x4xf32>, vector<1x4xf32> -> vector<16x4xf32>
    %cst_126 = arith.constant 1.000000e+00 : f32
    %211 = vector.broadcast %cst_126 : f32 to vector<16x1xf32>
    %212 = arith.subf %211, %118 : vector<16x1xf32>
    %213 = vector.broadcast %212 : vector<16x1xf32> to vector<16x4xf32>
    %214 = arith.mulf %210, %213 : vector<16x4xf32>
    %c3 = arith.constant 3 : index
    %c0_127 = arith.constant 0 : index
    %c0_128 = arith.constant 0 : index
    %c0_129 = arith.constant 0 : index
    %215 = vector.load %arg2[%c3, %c0_127, %c0_128, %c0_129] : memref<6x3x16x16xf32, #tpu.memory_space<vmem>>, vector<1x1x4x8xf32>
    %216 = vector.shape_cast %215 : vector<1x1x4x8xf32> to vector<4x8xf32>
    %c3_130 = arith.constant 3 : index
    %c1_131 = arith.constant 1 : index
    %c0_132 = arith.constant 0 : index
    %c0_133 = arith.constant 0 : index
    %217 = vector.load %arg2[%c3_130, %c1_131, %c0_132, %c0_133] : memref<6x3x16x16xf32, #tpu.memory_space<vmem>>, vector<1x1x4x8xf32>
    %218 = vector.shape_cast %217 : vector<1x1x4x8xf32> to vector<4x8xf32>
    %c3_134 = arith.constant 3 : index
    %c2_135 = arith.constant 2 : index
    %c0_136 = arith.constant 0 : index
    %c0_137 = arith.constant 0 : index
    %219 = vector.load %arg2[%c3_134, %c2_135, %c0_136, %c0_137] : memref<6x3x16x16xf32, #tpu.memory_space<vmem>>, vector<1x1x4x8xf32>
    %220 = vector.shape_cast %219 : vector<1x1x4x8xf32> to vector<4x8xf32>
    %c3_138 = arith.constant 3 : index
    %c0_139 = arith.constant 0 : index
    %221 = vector.load %arg3[%c3_138, %c0_139] : memref<6x16xf32, #tpu.memory_space<vmem>>, vector<1x8xf32>
    %cst_140 = arith.constant dense<0.000000e+00> : vector<16x8xf32>
    %222 = tpu.matmul %208, %216, %cst_140 {dimension_numbers = #tpu.dot_dimension_numbers<[1], [0], [0], [1], [0, 0, 1, 1], [], []>} : vector<16x4xf32>, vector<4x8xf32>, vector<16x8xf32> -> vector<16x8xf32>
    %cst_141 = arith.constant dense<0.000000e+00> : vector<16x8xf32>
    %223 = tpu.matmul %201, %218, %cst_141 {dimension_numbers = #tpu.dot_dimension_numbers<[1], [0], [0], [1], [0, 0, 1, 1], [], []>} : vector<16x4xf32>, vector<4x8xf32>, vector<16x8xf32> -> vector<16x8xf32>
    %224 = arith.addf %222, %223 : vector<16x8xf32>
    %cst_142 = arith.constant dense<0.000000e+00> : vector<16x8xf32>
    %225 = tpu.matmul %214, %220, %cst_142 {dimension_numbers = #tpu.dot_dimension_numbers<[1], [0], [0], [1], [0, 0, 1, 1], [], []>} : vector<16x4xf32>, vector<4x8xf32>, vector<16x8xf32> -> vector<16x8xf32>
    %226 = arith.addf %224, %225 : vector<16x8xf32>
    %227 = vector.broadcast %221 : vector<1x8xf32> to vector<16x8xf32>
    %228 = arith.addf %226, %227 : vector<16x8xf32>
    %cst_143 = arith.constant 0.000000e+00 : f32
    %229 = vector.broadcast %cst_143 : f32 to vector<16x8xf32>
    %230 = arith.maximumf %228, %229 : vector<16x8xf32>
    %cst_144 = arith.constant 0.000000e+00 : f32
    %231 = vector.broadcast %cst_144 : f32 to vector<1x8xf32>
    %232 = vector.extract_strided_slice %230 {offsets = [0, 0], sizes = [15, 8], strides = [1, 1]} : vector<16x8xf32> to vector<15x8xf32>
    %233 = tpu.concatenate %231, %232 in 0 : vector<1x8xf32>, vector<15x8xf32> -> vector<16x8xf32>
    %cst_145 = arith.constant 1.000000e+00 : f32
    %234 = vector.broadcast %cst_145 : f32 to vector<16x1xf32>
    %235 = arith.subf %234, %113 : vector<16x1xf32>
    %236 = vector.broadcast %235 : vector<16x1xf32> to vector<16x8xf32>
    %237 = arith.mulf %233, %236 : vector<16x8xf32>
    %238 = vector.extract_strided_slice %230 {offsets = [1, 0], sizes = [15, 8], strides = [1, 1]} : vector<16x8xf32> to vector<15x8xf32>
    %239 = tpu.concatenate %238, %231 in 0 : vector<15x8xf32>, vector<1x8xf32> -> vector<16x8xf32>
    %cst_146 = arith.constant 1.000000e+00 : f32
    %240 = vector.broadcast %cst_146 : f32 to vector<16x1xf32>
    %241 = arith.subf %240, %118 : vector<16x1xf32>
    %242 = vector.broadcast %241 : vector<16x1xf32> to vector<16x8xf32>
    %243 = arith.mulf %239, %242 : vector<16x8xf32>
    %244 = vector.broadcast %113 : vector<16x1xf32> to vector<16x8xf32>
    %245 = arith.mulf %230, %244 : vector<16x8xf32>
    %246 = arith.addf %237, %245 : vector<16x8xf32>
    %247 = vector.broadcast %118 : vector<16x1xf32> to vector<16x8xf32>
    %248 = arith.mulf %230, %247 : vector<16x8xf32>
    %249 = arith.addf %243, %248 : vector<16x8xf32>
    %cst_147 = arith.constant 7.500000e-01 : f32
    %250 = vector.broadcast %cst_147 : f32 to vector<16x8xf32>
    %251 = arith.mulf %250, %230 : vector<16x8xf32>
    %cst_148 = arith.constant 2.500000e-01 : f32
    %252 = vector.broadcast %cst_148 : f32 to vector<16x8xf32>
    %253 = arith.mulf %252, %246 : vector<16x8xf32>
    %254 = arith.addf %251, %253 : vector<16x8xf32>
    %c0_149 = arith.constant 0 : index
    %c0_150 = arith.constant 0 : index
    %255 = tpu.strided_load %arg9[%c0_149, %c0_150] {strides = array<i32: 2, 1>} : memref<32x8xf32, #tpu.memory_space<vmem>>, vector<16x8xf32>
    tpu.strided_store %arg9[%c0_149, %c0_150], %254 {strides = array<i32: 2, 1>} : memref<32x8xf32, #tpu.memory_space<vmem>>, vector<16x8xf32>
    %cst_151 = arith.constant 7.500000e-01 : f32
    %256 = vector.broadcast %cst_151 : f32 to vector<16x8xf32>
    %257 = arith.mulf %256, %230 : vector<16x8xf32>
    %cst_152 = arith.constant 2.500000e-01 : f32
    %258 = vector.broadcast %cst_152 : f32 to vector<16x8xf32>
    %259 = arith.mulf %258, %249 : vector<16x8xf32>
    %260 = arith.addf %257, %259 : vector<16x8xf32>
    %c1_153 = arith.constant 1 : index
    %c0_154 = arith.constant 0 : index
    %261 = tpu.strided_load %arg9[%c1_153, %c0_154] {strides = array<i32: 2, 1>} : memref<32x8xf32, #tpu.memory_space<vmem>>, vector<16x8xf32>
    tpu.strided_store %arg9[%c1_153, %c0_154], %260 {strides = array<i32: 2, 1>} : memref<32x8xf32, #tpu.memory_space<vmem>>, vector<16x8xf32>
    %c0_155 = arith.constant 0 : index
    %c0_156 = arith.constant 0 : index
    %262 = vector.load %arg9[%c0_155, %c0_156] : memref<32x8xf32, #tpu.memory_space<vmem>>, vector<32x8xf32>
    %cst_157 = arith.constant 0.000000e+00 : f32
    %263 = vector.broadcast %cst_157 : f32 to vector<1x8xf32>
    %264 = vector.extract_strided_slice %262 {offsets = [0, 0], sizes = [31, 8], strides = [1, 1]} : vector<32x8xf32> to vector<31x8xf32>
    %265 = tpu.concatenate %263, %264 in 0 : vector<1x8xf32>, vector<31x8xf32> -> vector<32x8xf32>
    %cst_158 = arith.constant 1.000000e+00 : f32
    %266 = vector.broadcast %cst_158 : f32 to vector<32x1xf32>
    %267 = arith.subf %266, %62 : vector<32x1xf32>
    %268 = vector.broadcast %267 : vector<32x1xf32> to vector<32x8xf32>
    %269 = arith.mulf %265, %268 : vector<32x8xf32>
    %270 = vector.extract_strided_slice %262 {offsets = [1, 0], sizes = [31, 8], strides = [1, 1]} : vector<32x8xf32> to vector<31x8xf32>
    %271 = tpu.concatenate %270, %263 in 0 : vector<31x8xf32>, vector<1x8xf32> -> vector<32x8xf32>
    %cst_159 = arith.constant 1.000000e+00 : f32
    %272 = vector.broadcast %cst_159 : f32 to vector<32x1xf32>
    %273 = arith.subf %272, %67 : vector<32x1xf32>
    %274 = vector.broadcast %273 : vector<32x1xf32> to vector<32x8xf32>
    %275 = arith.mulf %271, %274 : vector<32x8xf32>
    %c4 = arith.constant 4 : index
    %c0_160 = arith.constant 0 : index
    %c0_161 = arith.constant 0 : index
    %c0_162 = arith.constant 0 : index
    %276 = vector.load %arg2[%c4, %c0_160, %c0_161, %c0_162] : memref<6x3x16x16xf32, #tpu.memory_space<vmem>>, vector<1x1x8x16xf32>
    %277 = vector.shape_cast %276 : vector<1x1x8x16xf32> to vector<8x16xf32>
    %c4_163 = arith.constant 4 : index
    %c1_164 = arith.constant 1 : index
    %c0_165 = arith.constant 0 : index
    %c0_166 = arith.constant 0 : index
    %278 = vector.load %arg2[%c4_163, %c1_164, %c0_165, %c0_166] : memref<6x3x16x16xf32, #tpu.memory_space<vmem>>, vector<1x1x8x16xf32>
    %279 = vector.shape_cast %278 : vector<1x1x8x16xf32> to vector<8x16xf32>
    %c4_167 = arith.constant 4 : index
    %c2_168 = arith.constant 2 : index
    %c0_169 = arith.constant 0 : index
    %c0_170 = arith.constant 0 : index
    %280 = vector.load %arg2[%c4_167, %c2_168, %c0_169, %c0_170] : memref<6x3x16x16xf32, #tpu.memory_space<vmem>>, vector<1x1x8x16xf32>
    %281 = vector.shape_cast %280 : vector<1x1x8x16xf32> to vector<8x16xf32>
    %c4_171 = arith.constant 4 : index
    %c0_172 = arith.constant 0 : index
    %282 = vector.load %arg3[%c4_171, %c0_172] : memref<6x16xf32, #tpu.memory_space<vmem>>, vector<1x16xf32>
    %cst_173 = arith.constant dense<0.000000e+00> : vector<32x16xf32>
    %283 = tpu.matmul %269, %277, %cst_173 {dimension_numbers = #tpu.dot_dimension_numbers<[1], [0], [0], [1], [0, 0, 1, 1], [], []>} : vector<32x8xf32>, vector<8x16xf32>, vector<32x16xf32> -> vector<32x16xf32>
    %cst_174 = arith.constant dense<0.000000e+00> : vector<32x16xf32>
    %284 = tpu.matmul %262, %279, %cst_174 {dimension_numbers = #tpu.dot_dimension_numbers<[1], [0], [0], [1], [0, 0, 1, 1], [], []>} : vector<32x8xf32>, vector<8x16xf32>, vector<32x16xf32> -> vector<32x16xf32>
    %285 = arith.addf %283, %284 : vector<32x16xf32>
    %cst_175 = arith.constant dense<0.000000e+00> : vector<32x16xf32>
    %286 = tpu.matmul %275, %281, %cst_175 {dimension_numbers = #tpu.dot_dimension_numbers<[1], [0], [0], [1], [0, 0, 1, 1], [], []>} : vector<32x8xf32>, vector<8x16xf32>, vector<32x16xf32> -> vector<32x16xf32>
    %287 = arith.addf %285, %286 : vector<32x16xf32>
    %288 = vector.broadcast %282 : vector<1x16xf32> to vector<32x16xf32>
    %289 = arith.addf %287, %288 : vector<32x16xf32>
    %cst_176 = arith.constant 0.000000e+00 : f32
    %290 = vector.broadcast %cst_176 : f32 to vector<32x16xf32>
    %291 = arith.maximumf %289, %290 : vector<32x16xf32>
    %cst_177 = arith.constant 0.000000e+00 : f32
    %292 = vector.broadcast %cst_177 : f32 to vector<1x16xf32>
    %293 = vector.extract_strided_slice %291 {offsets = [0, 0], sizes = [31, 16], strides = [1, 1]} : vector<32x16xf32> to vector<31x16xf32>
    %294 = tpu.concatenate %292, %293 in 0 : vector<1x16xf32>, vector<31x16xf32> -> vector<32x16xf32>
    %cst_178 = arith.constant 1.000000e+00 : f32
    %295 = vector.broadcast %cst_178 : f32 to vector<32x1xf32>
    %296 = arith.subf %295, %62 : vector<32x1xf32>
    %297 = vector.broadcast %296 : vector<32x1xf32> to vector<32x16xf32>
    %298 = arith.mulf %294, %297 : vector<32x16xf32>
    %299 = vector.extract_strided_slice %291 {offsets = [1, 0], sizes = [31, 16], strides = [1, 1]} : vector<32x16xf32> to vector<31x16xf32>
    %300 = tpu.concatenate %299, %292 in 0 : vector<31x16xf32>, vector<1x16xf32> -> vector<32x16xf32>
    %cst_179 = arith.constant 1.000000e+00 : f32
    %301 = vector.broadcast %cst_179 : f32 to vector<32x1xf32>
    %302 = arith.subf %301, %67 : vector<32x1xf32>
    %303 = vector.broadcast %302 : vector<32x1xf32> to vector<32x16xf32>
    %304 = arith.mulf %300, %303 : vector<32x16xf32>
    %305 = vector.broadcast %62 : vector<32x1xf32> to vector<32x16xf32>
    %306 = arith.mulf %291, %305 : vector<32x16xf32>
    %307 = arith.addf %298, %306 : vector<32x16xf32>
    %308 = vector.broadcast %67 : vector<32x1xf32> to vector<32x16xf32>
    %309 = arith.mulf %291, %308 : vector<32x16xf32>
    %310 = arith.addf %304, %309 : vector<32x16xf32>
    %cst_180 = arith.constant 7.500000e-01 : f32
    %311 = vector.broadcast %cst_180 : f32 to vector<32x16xf32>
    %312 = arith.mulf %311, %291 : vector<32x16xf32>
    %cst_181 = arith.constant 2.500000e-01 : f32
    %313 = vector.broadcast %cst_181 : f32 to vector<32x16xf32>
    %314 = arith.mulf %313, %307 : vector<32x16xf32>
    %315 = arith.addf %312, %314 : vector<32x16xf32>
    %c0_182 = arith.constant 0 : index
    %c0_183 = arith.constant 0 : index
    %316 = tpu.strided_load %arg10[%c0_182, %c0_183] {strides = array<i32: 2, 1>} : memref<64x16xf32, #tpu.memory_space<vmem>>, vector<32x16xf32>
    tpu.strided_store %arg10[%c0_182, %c0_183], %315 {strides = array<i32: 2, 1>} : memref<64x16xf32, #tpu.memory_space<vmem>>, vector<32x16xf32>
    %cst_184 = arith.constant 7.500000e-01 : f32
    %317 = vector.broadcast %cst_184 : f32 to vector<32x16xf32>
    %318 = arith.mulf %317, %291 : vector<32x16xf32>
    %cst_185 = arith.constant 2.500000e-01 : f32
    %319 = vector.broadcast %cst_185 : f32 to vector<32x16xf32>
    %320 = arith.mulf %319, %310 : vector<32x16xf32>
    %321 = arith.addf %318, %320 : vector<32x16xf32>
    %c1_186 = arith.constant 1 : index
    %c0_187 = arith.constant 0 : index
    %322 = tpu.strided_load %arg10[%c1_186, %c0_187] {strides = array<i32: 2, 1>} : memref<64x16xf32, #tpu.memory_space<vmem>>, vector<32x16xf32>
    tpu.strided_store %arg10[%c1_186, %c0_187], %321 {strides = array<i32: 2, 1>} : memref<64x16xf32, #tpu.memory_space<vmem>>, vector<32x16xf32>
    %c0_188 = arith.constant 0 : index
    %c0_189 = arith.constant 0 : index
    %323 = vector.load %arg10[%c0_188, %c0_189] : memref<64x16xf32, #tpu.memory_space<vmem>>, vector<64x16xf32>
    %cst_190 = arith.constant 0.000000e+00 : f32
    %324 = vector.broadcast %cst_190 : f32 to vector<1x16xf32>
    %325 = vector.extract_strided_slice %323 {offsets = [0, 0], sizes = [63, 16], strides = [1, 1]} : vector<64x16xf32> to vector<63x16xf32>
    %326 = tpu.concatenate %324, %325 in 0 : vector<1x16xf32>, vector<63x16xf32> -> vector<64x16xf32>
    %cst_191 = arith.constant 1.000000e+00 : f32
    %327 = vector.broadcast %cst_191 : f32 to vector<64x1xf32>
    %328 = arith.subf %327, %13 : vector<64x1xf32>
    %329 = vector.broadcast %328 : vector<64x1xf32> to vector<64x16xf32>
    %330 = arith.mulf %326, %329 : vector<64x16xf32>
    %331 = vector.extract_strided_slice %323 {offsets = [1, 0], sizes = [63, 16], strides = [1, 1]} : vector<64x16xf32> to vector<63x16xf32>
    %332 = tpu.concatenate %331, %324 in 0 : vector<63x16xf32>, vector<1x16xf32> -> vector<64x16xf32>
    %cst_192 = arith.constant 1.000000e+00 : f32
    %333 = vector.broadcast %cst_192 : f32 to vector<64x1xf32>
    %334 = arith.subf %333, %18 : vector<64x1xf32>
    %335 = vector.broadcast %334 : vector<64x1xf32> to vector<64x16xf32>
    %336 = arith.mulf %332, %335 : vector<64x16xf32>
    %c5 = arith.constant 5 : index
    %c0_193 = arith.constant 0 : index
    %c0_194 = arith.constant 0 : index
    %c0_195 = arith.constant 0 : index
    %337 = vector.load %arg2[%c5, %c0_193, %c0_194, %c0_195] : memref<6x3x16x16xf32, #tpu.memory_space<vmem>>, vector<1x1x16x1xf32>
    %338 = vector.shape_cast %337 : vector<1x1x16x1xf32> to vector<16x1xf32>
    %c5_196 = arith.constant 5 : index
    %c1_197 = arith.constant 1 : index
    %c0_198 = arith.constant 0 : index
    %c0_199 = arith.constant 0 : index
    %339 = vector.load %arg2[%c5_196, %c1_197, %c0_198, %c0_199] : memref<6x3x16x16xf32, #tpu.memory_space<vmem>>, vector<1x1x16x1xf32>
    %340 = vector.shape_cast %339 : vector<1x1x16x1xf32> to vector<16x1xf32>
    %c5_200 = arith.constant 5 : index
    %c2_201 = arith.constant 2 : index
    %c0_202 = arith.constant 0 : index
    %c0_203 = arith.constant 0 : index
    %341 = vector.load %arg2[%c5_200, %c2_201, %c0_202, %c0_203] : memref<6x3x16x16xf32, #tpu.memory_space<vmem>>, vector<1x1x16x1xf32>
    %342 = vector.shape_cast %341 : vector<1x1x16x1xf32> to vector<16x1xf32>
    %c5_204 = arith.constant 5 : index
    %c0_205 = arith.constant 0 : index
    %343 = vector.load %arg3[%c5_204, %c0_205] : memref<6x16xf32, #tpu.memory_space<vmem>>, vector<1x1xf32>
    %cst_206 = arith.constant dense<0.000000e+00> : vector<64x1xf32>
    %344 = tpu.matmul %330, %338, %cst_206 {dimension_numbers = #tpu.dot_dimension_numbers<[1], [0], [0], [1], [0, 0, 1, 1], [], []>} : vector<64x16xf32>, vector<16x1xf32>, vector<64x1xf32> -> vector<64x1xf32>
    %cst_207 = arith.constant dense<0.000000e+00> : vector<64x1xf32>
    %345 = tpu.matmul %323, %340, %cst_207 {dimension_numbers = #tpu.dot_dimension_numbers<[1], [0], [0], [1], [0, 0, 1, 1], [], []>} : vector<64x16xf32>, vector<16x1xf32>, vector<64x1xf32> -> vector<64x1xf32>
    %346 = arith.addf %344, %345 : vector<64x1xf32>
    %cst_208 = arith.constant dense<0.000000e+00> : vector<64x1xf32>
    %347 = tpu.matmul %336, %342, %cst_208 {dimension_numbers = #tpu.dot_dimension_numbers<[1], [0], [0], [1], [0, 0, 1, 1], [], []>} : vector<64x16xf32>, vector<16x1xf32>, vector<64x1xf32> -> vector<64x1xf32>
    %348 = arith.addf %346, %347 : vector<64x1xf32>
    %349 = vector.broadcast %343 : vector<1x1xf32> to vector<64x1xf32>
    %350 = arith.addf %348, %349 : vector<64x1xf32>
    %351 = arith.negf %350 : vector<64x1xf32>
    %352 = math.exp %351 : vector<64x1xf32>
    %cst_209 = arith.constant 1.000000e+00 : f32
    %353 = vector.broadcast %cst_209 : f32 to vector<64x1xf32>
    %354 = arith.addf %353, %352 : vector<64x1xf32>
    %355 = arith.divf %353, %354 : vector<64x1xf32>
    %c0_210 = arith.constant 0 : index
    %c0_211 = arith.constant 0 : index
    %356 = vector.load %arg4[%c0_210, %c0_211] : memref<64x1xf32, #tpu.memory_space<vmem>>, vector<64x1xf32>
    tpu.vector_store %arg4[%c0_210, %c0_211], %355 {strides = array<i32>} : memref<64x1xf32, #tpu.memory_space<vmem>>, vector<64x1xf32>,
    return
  }
  func.func @transform_0(%arg0: i32) -> (i32, i32) {
    %c0_i32 = arith.constant 0 : i32
    %c0_i32_0 = arith.constant 0 : i32
    return %arg0, %c0_i32 : i32, i32
  }
  func.func @transform_1(%arg0: i32) -> (i32, i32, i32, i32) {
    %c0_i32 = arith.constant 0 : i32
    %c0_i32_0 = arith.constant 0 : i32
    %c0_i32_1 = arith.constant 0 : i32
    %c0_i32_2 = arith.constant 0 : i32
    %c0_i32_3 = arith.constant 0 : i32
    return %c0_i32, %c0_i32_0, %c0_i32_1, %c0_i32_2 : i32, i32, i32, i32
  }
  func.func @transform_2(%arg0: i32) -> (i32, i32) {
    %c0_i32 = arith.constant 0 : i32
    %c0_i32_0 = arith.constant 0 : i32
    %c0_i32_1 = arith.constant 0 : i32
    return %c0_i32, %c0_i32_0 : i32, i32
  }
  func.func @transform_3(%arg0: i32) -> (i32, i32) {
    %c0_i32 = arith.constant 0 : i32
    %c0_i32_0 = arith.constant 0 : i32
    return %arg0, %c0_i32 : i32, i32
  }
}

</mosaic_0001>

<bundles_post_ra>
// kernel: timeseries_autoencoder.1
= control target key start
LH: loop header
LB: loop body
LE: loop exit
PB: predicated region body
PF: predicated region fallthrough
CT: control target
= control target key end

     0   :  { %vm112_vm0 = vcmask 1040384   ;;  %v22_v0 = vlaneseq  ;;  %vm200_vm1 = vcmask 7168   ;;  %vm153_vm2 = vcmask 1046528   ;;  %s3927_s1 = inlined_call_operand.vmem [shape: f32[6,3,16,16], index: 1, kind: input, shape index: {}]   ;;  %s3928_s0 = inlined_call_operand.vmem [shape: f32[64,1], index: 0, kind: input, shape index: {}]   ;;  %s3929_s2 = inlined_call_operand.vmem [shape: f32[6,16], index: 2, kind: input, shape index: {}]   ;;  %s3930_s3 = inlined_call_operand.vmem [shape: f32[64,1], index: 3, kind: output, shape index: {}]  }
   0x1   :  { %v2702_v1 = vld [vmem:[%s3927_s1 + $0x10] sm:$0x1]  ;;  %v3173_v2 = vld [vmem:[%s3928_s0] sm:$0xff]  ;;  %v3178_v3 = vld [vmem:[%s3928_s0 + $0x8] sm:$0xff]  ;;  %v3146_v55 = vmov 0.0  }
   0x2   :  { %2937 = vmatprep.subr.msk.mxu0 %vm112_vm0, %v2702_v1  ;;  %v3181_v4 = vshrl.u32 %v22_v0, 7  ;;  %v113_v5 = vrot.slane %v3173_v2, 7  ;;  %2939 = vmatprep.mubr.msk.f32.mxu0 %vm200_vm1, %v3173_v2  ;;  %v114_v6 = vrot.slane %v3178_v3, 7  ;;  %v194_v7 = vld [vmem:[%s3927_s1] sm:$0x1]  ;;  %v3194_v8 = vld [vmem:[%s3928_s0 + $0x10] sm:$0xff] }
   0x3   :  { %2938 = vmatpush3.msk.msra.mxu0 %vm112_vm0, %v2702_v1  ;;  %3111 = vmatprep.subr.msk.mxu1 %vm112_vm0, %v194_v7  ;;  %v155_v11 = vrot.slane %v3178_v3, 1  ;;  %v154_v13 = vrot.slane %v3173_v2, 1  ;;  %v157_v14 = vrot.slane %v3194_v8, 1  ;;  %v3216_v15 = vld [vmem:[%s3928_s0 + $0x18] sm:$0xff]  ;;  %v3221_v16 = vld [vmem:[%s3927_s1 + $0x20] sm:$0x1] }
   0x4   :  { %v3198_v9 = vcvt.s32.f32 %v3181_v4  ;;  %v24_v10 = vadd.s32 8, %v3181_v4  ;;  %2940 = vmatmul.mubr.msk.f32.vlgmr.msra.gmra.mxu0 %vm200_vm1, %v3178_v3  ;;  %2951 = vmatprep.subr.msk.mxu0 %vm112_vm0, %v194_v7  ;;  %v3206_v12 = vsel %vm112_vm0, 0.0, %v113_v5  ;;  %v3227_v19 = vsel %vm112_vm0, %v113_v5, %v114_v6  ;;  %v3233_v21 = vld [vmem:[%s3928_s0 + $0x20] sm:$0xff]  ;;  %v3245_v26 = vld [vmem:[%s3928_s0 + $0x28] sm:$0xff]  ;;  %v3257_v31 = vld [vmem:[%s3928_s0 + $0x30] sm:$0xff] }
   0x5   :  { %2952 = vmatpush3.msk.msra.mxu0 %vm112_vm0, %v194_v7  ;;  %2942 = vmatprep.mubr.msk.f32.mxu0 %vm200_vm1, %v3194_v8  ;;  %v116_v20 = vrot.slane %v3194_v8, 7  ;;  %v118_v22 = vrot.slane %v3216_v15, 7  ;;  %v159_v23 = vrot.slane %v3216_v15, 1  ;;  %v120_v24 = vrot.slane %v3233_v21, 7  ;;  %v3266_v34 = vld [vmem:[%s3928_s0 + $0x38] sm:$0xff] }
   0x6   :  { %v40_v17 = vmul.f32 0.03125, %v3198_v9  ;;  %v3224_v18 = vcvt.s32.f32 %v24_v10  ;;  %2965 = vmatprep.subr.msk.mxu0 %vm112_vm0, %v3221_v16  ;;  %3112 = vmatpush3.msk.msra.mxu1 %vm112_vm0, %v194_v7  ;;  %v161_v25 = vrot.slane %v3233_v21, 1  ;;  %v158_v29 = vsel %vm153_vm2, %v155_v11, %v157_v14 }
   0x7   :  { %v122_v30 = vrot.slane %v3245_v26, 7  ;;  %v163_v32 = vrot.slane %v3245_v26, 1  ;;  %v124_v33 = vrot.slane %v3257_v31, 7  ;;  %v25_v35 = vadd.s32 16, %v3181_v4 }
   0x8   :  { %v48_v27 = vfloor.f32 %v40_v17  ;;  %v41_v28 = vmul.f32 0.03125, %v3224_v18  ;;  %2943 = vmatmul.mubr.msk.f32.gmra.mxu0 %vm200_vm1, %v3216_v15  ;;  %v26_v36 = vadd.s32 24, %v3181_v4  ;;  %v165_v39 = vrot.slane %v3257_v31, 1 }
   0x9   :  { %2945 = vmatprep.mubr.msk.f32.mxu0 %vm200_vm1, %v3233_v21  ;;  %v167_v40 = vrot.slane %v3266_v34, 1  ;;  %v3272_v41 = vcvt.s32.f32 %v25_v35  ;;  %v3275_v42 = vsel %vm112_vm0, %v114_v6, %v116_v20  ;;  %v3280_v44 = vadd.s32 32, %v3181_v4 }
   0xa   :  { %v56_v37 = vmul.f32 32.0, %v48_v27  ;;  %v49_v38 = vfloor.f32 %v41_v28  ;;  %v3277_v43 = vcvt.s32.f32 %v26_v36  ;;  %v119_v47 = vsel %vm112_vm0, %v116_v20, %v118_v22 }
   0xb   :  { %v28_v48 = vadd.s32 40, %v3181_v4  ;;  %v42_v49 = vmul.f32 0.03125, %v3272_v41  ;;  %v156_v51 = vsel %vm153_vm2, %v154_v13, %v155_v11  ;;  %v35_v52 = vcvt.s32.f32 %v3280_v44 }
   0xc   :  { %v64_v45 = vsub.f32 %v3198_v9, %v56_v37  ;;  %v57_v46 = vmul.f32 32.0, %v49_v38  ;;  %2946 = vmatmul.mubr.msk.f32.gmra.mxu0 %vm200_vm1, %v3245_v26  ;;  %v43_v50 = vmul.f32 0.03125, %v3277_v43  ;;  %v160_v20 = vsel %vm153_vm2, %v157_v14, %v159_v23 }
   0xd   :  { %2948 = vmatprep.mubr.msk.f32.mxu0 %vm200_vm1, %v3257_v31  ;;  %v36_v54 = vcvt.s32.f32 %v28_v48  ;;  %v50_v57 = vfloor.f32 %v42_v49  ;;  %v44_v11 = vmul.f32 0.03125, %v35_v52  ;;  %v29_v27 = vadd.s32 48, %v3181_v4  ;;  %v2735_v31 = vld [vmem:[%s3927_s1 + $0x48] sm:$0xff] }
   0xe   :  { %vm72_vm3 = vcmp.lt.f32.partialorder %v64_v45, 0.5  ;;  %v65_v53 = vsub.f32 %v3224_v18, %v57_v46  ;;  %vm88_vm4 = vcmp.gt.f32.partialorder %v64_v45, 30.5  ;;  %v51_v58 = vfloor.f32 %v43_v50  ;;  %2979 = vmatprep.subr.mxu1 %v2735_v31 }
   0xf   :  { %v3297_v56 = vsel %vm72_vm3, 1.0, %v3146_v55  ;;  %v3300_v59 = vsel %vm88_vm4, 1.0, %v3146_v55  ;;  %v58_v0 = vmul.f32 32.0, %v50_v57  ;;  %v45_v13 = vmul.f32 0.03125, %v36_v54 }
  0x10   :  { %v3945_v60 = vsub.f32 1.0, %v3297_v56  ;;  %vm73_vm5 = vcmp.lt.f32.partialorder %v65_v53, 0.5  ;;  %vm89_vm6 = vcmp.gt.f32.partialorder %v65_v53, 30.5  ;;  %2949 = vmatmul.mubr.msk.f32.gmra.mxu0 %vm200_vm1, %v3266_v34  ;;  %v3940_v61 = vsub.f32 1.0, %v3300_v59 }
  0x11   :  { %v3307_v62 = vsel %vm73_vm5, 1.0, %v3146_v55  ;;  %v3310_v63 = vsel %vm89_vm6, 1.0, %v3146_v55  ;;  %v59_v1 = vmul.f32 32.0, %v51_v58  ;;  %v66_v7 = vsub.f32 %v3272_v41, %v58_v0 }
  0x12   :  { %v145_v2 = vmul.f32 %v3945_v60, %v3206_v12  ;;  %v3946_v3 = vsub.f32 1.0, %v3307_v62  ;;  %v3938_v5 = vsub.f32 1.0, %v3310_v63  ;;  %v186_v6 = vmul.f32 %v3940_v61, %v156_v51 }
  0x13   :  { %v67_v10 = vsub.f32 %v3277_v43, %v59_v1  ;;  %vm74_vm7 = vcmp.lt.f32.partialorder %v66_v7, 0.5  ;;  %vm90_vm8 = vcmp.gt.f32.partialorder %v66_v7, 30.5  ;;  %v52_v28 = vfloor.f32 %v44_v11 }
  0x14   :  { %v146_v17 = vmul.f32 %v3946_v3, %v3227_v19  ;;  %v187_v12 = vmul.f32 %v3938_v5, %v158_v29  ;;  %2953 = vmatprep.mubr.msk.f32.mxu0 %vm200_vm1, %v145_v2  ;;  %v3335_v19 = vsel %vm74_vm7, 1.0, %v3146_v55  ;;  %v53_v35 = vfloor.f32 %v45_v13 }
  0x15   :  { %vm75_vm9 = vcmp.lt.f32.partialorder %v67_v10, 0.5  ;;  %v3341_v36 = vsel %vm90_vm8, 1.0, %v3146_v55  ;;  %v3944_v8 = vsub.f32 1.0, %v3335_v19  ;;  %v60_v37 = vmul.f32 32.0, %v52_v28 }
  0x16   :  { %2954 = vmatmul.mubr.msk.f32.vlgmr.msra.gmra.mxu0 %vm200_vm1, %v146_v17  ;;  %v3338_v29 = vsel %vm75_vm9, 1.0, %v3146_v55  ;;  %v3936_v38 = vsub.f32 1.0, %v3341_v36  ;;  %v121_v44 = vsel %vm112_vm0, %v118_v22, %v120_v24  ;;  %v61_v45 = vmul.f32 32.0, %v53_v35 }
  0x17   :  { %2966 = vmatpush3.msk.msra.mxu0 %vm112_vm0, %v3221_v16  ;;  %v3943_v14 = vsub.f32 1.0, %v3338_v29  ;;  %2967 = vmatprep.mubr.msk.f32.mxu0 %vm200_vm1, %v186_v6  ;;  %v37_v46 = vcvt.s32.f32 %v29_v27  ;;  %vm91_vm10 = vcmp.gt.f32.partialorder %v67_v10, 30.5  ;;  %v147_v16 = vmul.f32 %v3944_v8, %v3275_v42 }
  0x18   :  { %v68_v49 = vsub.f32 %v35_v52, %v60_v37  ;;  %v188_v50 = vmul.f32 %v3936_v38, %v160_v20  ;;  %v69_v51 = vsub.f32 %v36_v54, %v61_v45  ;;  %v3363_v22 = vsel %vm91_vm10, 1.0, %v3146_v55 }
  0x19   :  { %v148_v48 = vmul.f32 %v3943_v14, %v119_v47  ;;  %v46_v53 = vmul.f32 0.03125, %v37_v46  ;;  %v162_v42 = vsel %vm153_vm2, %v159_v23, %v161_v25  ;;  %2956 = vmatprep.mubr.msk.f32.mxu1 %vm200_vm1, %v147_v16  ;;  %v123_v47 = vsel %vm112_vm0, %v120_v24, %v122_v30 }
  0x1a   :  { %2968 = vmatmul.mubr.msk.f32.vlgmr.msra.gmra.mxu0 %vm200_vm1, %v187_v12  ;;  %vm76_vm11 = vcmp.lt.f32.partialorder %v68_v49, 0.5  ;;  %v3935_v52 = vsub.f32 1.0, %v3363_v22  ;;  %v30_v54 = vadd.s32 56, %v3181_v4  ;;  %vm77_vm12 = vcmp.lt.f32.partialorder %v69_v51, 0.5 }
  0x1b   :  { %2970 = vmatprep.mubr.msk.f32.mxu0 %vm200_vm1, %v188_v50  ;;  %2957 = vmatmul.mubr.msk.f32.vlgmr.msra.gmra.mxu1 %vm200_vm1, %v148_v48  ;;  %v3381_v15 = vsel %vm76_vm11, 1.0, %v3146_v55  ;;  %v54_v23 = vfloor.f32 %v46_v53  ;;  %vm92_vm13 = vcmp.gt.f32.partialorder %v68_v49, 30.5  ;;  %v3385_v58 = vsel %vm77_vm12, 1.0, %v3146_v55 }
  0x1c   :  { %v3942_v57 = vsub.f32 1.0, %v3381_v15  ;;  %v189_v24 = vmul.f32 %v3935_v52, %v162_v42  ;;  %v38_v0 = vcvt.s32.f32 %v30_v54  ;;  %v3941_v1 = vsub.f32 1.0, %v3385_v58  ;;  %v2737_v54 = vld [vmem:[%s3927_s1 + $0x58] sm:$0xff]  ;;  %2980 = vmatpush3.msra.mxu1 %v2735_v31 }
  0x1d   :  { %v62_v4 = vmul.f32 32.0, %v54_v23  ;;  %v3391_v2 = vsel %vm92_vm13, 1.0, %v3146_v55  ;;  %v164_v6 = vsel %vm153_vm2, %v161_v25, %v163_v32  ;;  %vm93_vm14 = vcmp.gt.f32.partialorder %v69_v51, 30.5  ;;  %2999 = vmatprep.subr.mxu0 %v2737_v54  ;;  %v2736_v23 = vld [vmem:[%s3927_s1 + $0x50] sm:$0xff] }
  0x1e   :  { %v149_v7 = vmul.f32 %v3942_v57, %v121_v44  ;;  %2971 = vmatmul.mubr.msk.f32.gmra.mxu0 %vm200_vm1, %v189_v24  ;;  %v47_v10 = vmul.f32 0.03125, %v38_v0  ;;  %v3934_v11 = vsub.f32 1.0, %v3391_v2  ;;  %v150_v13 = vmul.f32 %v3941_v1, %v123_v47  ;;  %v3481_v24 = vld [vmem:[%s3927_s1 + $0x38] sm:$0xff] }
  0x1f   :  { %v70_v17 = vsub.f32 %v37_v46, %v62_v4  ;;  %v3405_v12 = vsel %vm93_vm14, 1.0, %v3146_v55  ;;  %v166_v21 = vsel %vm153_vm2, %v163_v32, %v165_v39  ;;  %v125_v28 = vsel %vm112_vm0, %v122_v30, %v124_v33  ;;  %3000 = vmatpush3.msra.mxu0 %v2737_v54 }
  0x20   :  { %2959 = vmatprep.mubr.msk.f32.mxu1 %vm200_vm1, %v149_v7  ;;  %v55_v25 = vfloor.f32 %v47_v10  ;;  %v190_v20 = vmul.f32 %v3934_v11, %v164_v6  ;;  %v3933_v27 = vsub.f32 1.0, %v3405_v12  ;;  %v168_v32 = vsel %vm153_vm2, %v165_v39, %v167_v40  ;;  %3001 = vmatprep.subr.mxu0 %v2736_v23 }
  0x21   :  { %2960 = vmatmul.mubr.msk.f32.gmra.mxu1 %vm200_vm1, %v150_v13  ;;  %vm78_vm15 = vcmp.lt.f32.partialorder %v70_v17, 0.5  ;;  %vm94_vm3 = vcmp.gt.f32.partialorder %v70_v17, 30.5  ;;  %v126_v30 = vrot.slane %v3266_v34, 7  ;;  %v177_v49 = vsel %vm153_vm2, %v167_v40, 0.0  ;;  %3002 = vmatpush3.msra.mxu0 %v2736_v23 }
  0x22   :  { %v3428_v35 = vsel %vm78_vm15, 1.0, %v3146_v55  ;;  %v63_v37 = vmul.f32 32.0, %v55_v25  ;;  %2973 = vmatprep.mubr.msk.f32.mxu0 %vm200_vm1, %v190_v20  ;;  %v191_v44 = vmul.f32 %v3933_v27, %v166_v21  ;;  %v3434_v26 = vsel %vm94_vm3, 1.0, %v3146_v55 }
  0x23   :  { %v3939_v45 = vsub.f32 1.0, %v3428_v35  ;;  %v3932_v46 = vsub.f32 1.0, %v3434_v26  ;;  %v127_v51 = vsel %vm112_vm0, %v124_v33, %v126_v30  ;;  %v2734_v33 = vld [vmem:[%s3927_s1 + $0x40] sm:$0xff]  ;;  %vm617_vm6 = vcmask 130048  }
  0x24   :  { %v71_v16 = vsub.f32 %v38_v0, %v63_v37  ;;  %2974 = vmatmul.mubr.msk.f32.gmra.mxu0 %vm200_vm1, %v191_v44  ;;  %2981 = vmatprep.subr.mxu1 %v2734_v33  ;;  %vm1035_vm15 = vcmask 64512  }
  0x25   :  { %v151_v39 = vmul.f32 %v3939_v45, %v125_v28  ;;  %v192_v48 = vmul.f32 %v3932_v46, %v168_v32  ;;  %2982 = vmatpush3.msra.mxu1 %v2734_v33  ;;  %v3491_v32 = vld [vmem:[%s3929_s2] ss:$0 sm:$0xff] }
  0x26   :  { %vm79_vm4 = vcmp.lt.f32.partialorder %v71_v16, 0.5  ;;  %vm95_vm5 = vcmp.gt.f32.partialorder %v71_v16, 30.5  ;;  %2989 = vmatprep.subr.mxu1 %v3481_v24 }
  0x27   :  { %2962 = vmatprep.mubr.msk.f32.mxu1 %vm200_vm1, %v151_v39  ;;  %v3449_v50 = vsel %vm79_vm4, 1.0, %v3146_v55  ;;  %2976 = vmatprep.mubr.msk.f32.mxu0 %vm200_vm1, %v192_v48  ;;  %v3456_v53 = vsel %vm95_vm5, 1.0, %v3146_v55 }
  0x28   :  { %3948 = vst [vmem:[#allocation8_spill] sm:$0xff] %v3456_v53  ;;  %v3937_v42 = vsub.f32 1.0, %v3449_v50  ;;  %v3931_v34 = vsub.f32 1.0, %v3456_v53 }
  0x2a   :  { %v152_v40 = vmul.f32 %v3937_v42, %v127_v51  ;;  %v193_v47 = vmul.f32 %v3931_v34, %v177_v49  ;;  %v646_v51 = vmul.f32 0.0625, %v3198_v9 }
  0x2c   :  { %2963 = vmatmul.mubr.msk.f32.gmra.mxu1 %vm200_vm1, %v152_v40  ;;  %2977 = vmatmul.mubr.msk.f32.gmra.mxu0 %vm200_vm1, %v193_v47 }
  0xc4   :  { %v2941_v0 = vpop.f32.mrf.mxu0 }
  0xc6   :  { %v286_v4 = vpop.f32.mrf.mxu0 }
  0xc8   :  { %v2944_v6 = vpop.f32.mrf.mxu0 }
  0xca   :  { %v296_v7 = vpop.f32.mrf.mxu0 }
  0xcc   :  { %v2947_v10 = vpop.f32.mrf.mxu0 }
  0xce   :  { %v306_v13 = vpop.f32.mrf.mxu0 }
  0xd0   :  { %v3484_v17 = vpop.f32.mrf.mxu0 }
  0xd2   :  { %v3486_v21 = vpop.f32.mrf.mxu0 }
  0xd6   :  { %v2955_v25 = vpop.f32.mrf.mxu0 }
  0xd7   :  { %v424_v28 = vadd.f32 %v2955_v25, %v2941_v0 }
  0xd8   :  { %v418_v20 = vpop.f32.mrf.mxu0 }
  0xd9   :  { %v419_v44 = vadd.f32 %v418_v20, %v286_v4  ;;  %v650_v20 = vfloor.f32 %v646_v51 }
  0xda   :  { %v2969_v37 = vpop.f32.mrf.mxu0 }
  0xdb   :  { %v590_v30 = vadd.f32 %v2969_v37, %v424_v28  ;;  %v2958_v16 = vpop.f32.mrf.mxu1 }
  0xdc   :  { %v550_v39 = vpop.f32.mrf.mxu0  ;;  %v434_v40 = vadd.f32 %v2958_v16, %v2944_v6  ;;  %v647_v6 = vmul.f32 0.0625, %v3224_v18 }
  0xdd   :  { %v602_v48 = vadd.f32 %v3491_v32, %v590_v30  ;;  %v589_v49 = vadd.f32 %v550_v39, %v419_v44  ;;  %v428_v47 = vpop.f32.mrf.mxu1 }
  0xde   :  { %v2972_v54 = vpop.f32.mrf.mxu0  ;;  %v429_v23 = vadd.f32 %v428_v47, %v296_v7 }
  0xdf   :  { %v610_v31 = vmax.f32 %v602_v48, 0.0  ;;  %v601_v33 = vadd.f32 %v3491_v32, %v589_v49  ;;  %v592_v0 = vadd.f32 %v2972_v54, %v434_v40  ;;  %v654_v49 = vmul.f32 16.0, %v650_v20 }
  0xe0   :  { %v560_v25 = vpop.f32.mrf.mxu0 }
  0xe1   :  { %619 = vst.msk [vmem:[#allocation2 + $0x8] sm:$0xff] %vm617_vm6, %v610_v31  ;;  %v609_v4 = vmax.f32 %v601_v33, 0.0  ;;  %v2961_v28 = vpop.f32.mrf.mxu1  ;;  %v604_v37 = vadd.f32 %v3491_v32, %v592_v0  ;;  %v591_v44 = vadd.f32 %v560_v25, %v429_v23  ;;  %v651_v33 = vfloor.f32 %v647_v6 }
  0xe2   :  { %v444_v30 = vadd.f32 %v2961_v28, %v2947_v10  ;;  %v658_v10 = vsub.f32 %v3198_v9, %v654_v49  ;;  %v648_v0 = vmul.f32 0.0625, %v3272_v41 }
  0xe3   :  { %618 = vst.msk [vmem:[#allocation2] sm:$0xff] %vm617_vm6, %v609_v4  ;;  %v438_v16 = vpop.f32.mrf.mxu1  ;;  %v612_v39 = vmax.f32 %v604_v37, 0.0  ;;  %v603_v48 = vadd.f32 %v3491_v32, %v591_v44  ;;  %v655_v37 = vmul.f32 16.0, %v651_v33  ;;  %v649_v44 = vmul.f32 0.0625, %v3277_v43 }
  0xe4   :  { %v2975_v7 = vpop.f32.mrf.mxu0  ;;  %v439_v40 = vadd.f32 %v438_v16, %v306_v13  ;;  %vm670_vm7 = vcmp.gt.f32.partialorder %v658_v10, 14.5  ;;  %vm662_vm9 = vcmp.lt.f32.partialorder %v658_v10, 0.5 }
  0xe5   :  { %621 = vst.msk [vmem:[#allocation2 + $0x18] sm:$0xff] %vm617_vm6, %v612_v39  ;;  %v611_v47 = vmax.f32 %v603_v48, 0.0  ;;  %v594_v51 = vadd.f32 %v2975_v7, %v444_v30  ;;  %v652_v39 = vfloor.f32 %v648_v0  ;;  %v3516_v7 = vsel %vm670_vm7, 1.0, %v3146_v55 }
  0xe6   :  { %v570_v31 = vpop.f32.mrf.mxu0  ;;  %v653_v33 = vfloor.f32 %v649_v44  ;;  %v3523_v0 = vsub.f32 1.0, %v3516_v7 }
  0xe7   :  { %620 = vst.msk [vmem:[#allocation2 + $0x10] sm:$0xff] %vm617_vm6, %v611_v47  ;;  %v606_v54 = vadd.f32 %v3491_v32, %v594_v51  ;;  %v593_v23 = vadd.f32 %v570_v31, %v439_v40  ;;  %v659_v31 = vsub.f32 %v3224_v18, %v655_v37 }
  0xe8   :  { %v657_v44 = vmul.f32 16.0, %v653_v33 }
  0xe9   :  { %v614_v4 = vmax.f32 %v606_v54, 0.0  ;;  %v605_v25 = vadd.f32 %v3491_v32, %v593_v23  ;;  %vm671_vm8 = vcmp.gt.f32.partialorder %v659_v31, 14.5  ;;  %vm663_vm10 = vcmp.lt.f32.partialorder %v659_v31, 0.5 }
  0xea   :  { %v626_v20 = vld [vmem:[#allocation2] ss:$2 sm:$0xff]  ;;  %v634_v13 = vld [vmem:[#allocation2 + $0x1] ss:$2 sm:$0xff]  ;;  %v661_v33 = vsub.f32 %v3277_v43, %v657_v44 }
  0xeb   :  { %v3507_v28 = vmax.f32 %v626_v20, %v634_v13  ;;  %623 = vst.msk [vmem:[#allocation2 + $0x28] sm:$0xff] %vm617_vm6, %v614_v4  ;;  %v613_v6 = vmax.f32 %v605_v25, 0.0  ;;  %v656_v25 = vmul.f32 16.0, %v652_v39  ;;  %v3537_v39 = vsel %vm671_vm8, 1.0, %v3146_v55 }
  0xec   :  { %v2964_v30 = vpop.f32.mrf.mxu1  ;;  %v2978_v16 = vpop.f32.mrf.mxu0  ;;  %vm673_vm13 = vcmp.gt.f32.partialorder %v661_v33, 14.5  ;;  %vm665_vm14 = vcmp.lt.f32.partialorder %v661_v33, 0.5  ;;  %vm1416_vm8 = vcmask 1043456  }
  0xed   :  { %2983 = vmatprep.mubr.msk.f32.mxu1 %vm617_vm6, %v3507_v28  ;;  %v454_v48 = vadd.f32 %v2964_v30, %v3484_v17  ;;  %622 = vst.msk [vmem:[#allocation2 + $0x20] sm:$0xff] %vm617_vm6, %v613_v6  ;;  %v2732_v17 = vld [vmem:[%s3927_s1 + $0x30] sm:$0xff]  ;;  %v702_v37 = vrot.slane %v3507_v28, 1 }
  0xee   :  { %v448_v49 = vpop.f32.mrf.mxu1  ;;  %v580_v40 = vpop.f32.mrf.mxu0  ;;  %v628_v47 = vld [vmem:[#allocation2 + $0x10] ss:$2 sm:$0xff]  ;;  %v636_v51 = vld [vmem:[#allocation2 + $0x11] ss:$2 sm:$0xff] }
  0xef   :  { %v449_v54 = vadd.f32 %v448_v49, %v3486_v21  ;;  %v596_v23 = vadd.f32 %v2978_v16, %v454_v48  ;;  %v3520_v4 = vmax.f32 %v628_v47, %v636_v51 }
  0xf1   :  { %v608_v20 = vadd.f32 %v3491_v32, %v596_v23  ;;  %v595_v13 = vadd.f32 %v580_v40, %v449_v54  ;;  %2984 = vmatmul.mubr.msk.f32.vlgmr.msra.gmra.mxu1 %vm617_vm6, %v3520_v4  ;;  %v703_v21 = vrot.slane %v3520_v4, 1  ;;  %v3550_v23 = vsel %vm662_vm9, 1.0, %v3146_v55 }
  0xf2   :  { %2990 = vmatpush3.msra.mxu1 %v3481_v24  ;;  %v660_v24 = vsub.f32 %v3272_v41, %v656_v25  ;;  %v682_v41 = vrot.slane %v3507_v28, 7  ;;  %v3556_v43 = vsub.f32 1.0, %v3550_v23  ;;  %v3559_v25 = vsel %vm663_vm10, 1.0, %v3146_v55 }
  0xf3   :  { %v616_v6 = vmax.f32 %v608_v20, 0.0  ;;  %v607_v30 = vadd.f32 %v3491_v32, %v595_v13  ;;  %v704_v16 = vsel %vm153_vm2, %v702_v37, %v703_v21  ;;  %2991 = vmatprep.subr.mxu1 %v2732_v17  ;;  %v3544_v32 = vsub.f32 1.0, %v3537_v39 }
  0xf4   :  { %v630_v48 = vld [vmem:[#allocation2 + $0x20] ss:$2 sm:$0xff]  ;;  %v638_v49 = vld [vmem:[#allocation2 + $0x21] ss:$2 sm:$0xff]  ;;  %v718_v40 = vmul.f32 %v3523_v0, %v704_v16  ;;  %2992 = vmatpush3.msra.mxu1 %v2732_v17  ;;  %vm664_vm11 = vcmp.lt.f32.partialorder %v660_v24, 0.5  ;;  %vm672_vm12 = vcmp.gt.f32.partialorder %v660_v24, 14.5 }
  0xf5   :  { %625 = vst.msk [vmem:[#allocation2 + $0x38] sm:$0xff] %vm617_vm6, %v616_v6  ;;  %v615_v47 = vmax.f32 %v607_v30, 0.0  ;;  %v643_v51 = vmax.f32 %v630_v48, %v638_v49  ;;  %v683_v20 = vrot.slane %v3520_v4, 7  ;;  %v3564_v13 = vsel %vm664_vm11, 1.0, %v3146_v55 }
  0xf6   :  { %3003 = vmatprep.mubr.msk.f32.mxu0 %vm617_vm6, %v718_v40  ;;  %v693_v31 = vsel %vm112_vm0, 0.0, %v682_v41  ;;  %v3568_v37 = vsel %vm672_vm12, 1.0, %v3146_v55  ;;  %v3574_v4 = vsub.f32 1.0, %v3559_v25  ;;  %v3577_v16 = vsub.f32 1.0, %v3564_v13 }
  0xf7   :  { %624 = vst.msk [vmem:[#allocation2 + $0x30] sm:$0xff] %vm617_vm6, %v615_v47  ;;  %v705_v54 = vrot.slane %v643_v51, 1  ;;  %2986 = vmatprep.mubr.msk.f32.mxu1 %vm617_vm6, %v643_v51  ;;  %v685_v28 = vrot.slane %v643_v51, 7  ;;  %v3580_v48 = vsel %vm665_vm14, 1.0, %v3146_v55  ;;  %v684_v49 = vsel %vm112_vm0, %v682_v41, %v683_v20 }
  0xf8   :  { %v698_v40 = vmul.f32 %v3556_v43, %v693_v31  ;;  %v3585_v47 = vsub.f32 1.0, %v3568_v37  ;;  %vm1346_vm9 = vcmask 31744  }
  0xf9   :  { %v706_v17 = vsel %vm153_vm2, %v703_v21, %v705_v54  ;;  %v3571_v21 = vsel %vm673_vm13, 1.0, %v3146_v55 }
  0xfa   :  { %v719_v10 = vmul.f32 %v3544_v32, %v706_v17  ;;  %v3588_v51 = vsub.f32 1.0, %v3571_v21  ;;  %v686_v17 = vsel %vm112_vm0, %v683_v20, %v685_v28  ;;  %v2752_v20 = vld [vmem:[%s3927_s1 + $0x70] sm:$0xff] }
  0xfb   :  { %3009 = vmatprep.subr.mxu1 %v2752_v20 }
  0xfc   :  { %3004 = vmatmul.mubr.msk.f32.vlgmr.msra.gmra.mxu0 %vm617_vm6, %v719_v10  ;;  %v699_v10 = vmul.f32 %v3574_v4, %v684_v49 }
  0xfe   :  { %v632_v44 = vld [vmem:[#allocation2 + $0x30] ss:$2 sm:$0xff]  ;;  %v640_v6 = vld [vmem:[#allocation2 + $0x31] ss:$2 sm:$0xff] }
  0xff   :  { %v644_v30 = vmax.f32 %v632_v44, %v640_v6  ;;  %v3597_v44 = vsub.f32 1.0, %v3580_v48  ;;  %v700_v6 = vmul.f32 %v3577_v16, %v686_v17  ;;  %v1050_v17 = vmul.f32 0.125, %v3198_v9 }
 0x101   :  { %v687_v24 = vrot.slane %v644_v30, 7  ;;  %v707_v33 = vrot.slane %v644_v30, 1  ;;  %2987 = vmatmul.mubr.msk.f32.gmra.mxu1 %vm617_vm6, %v644_v30 }
 0x102   :  { %2993 = vmatprep.mubr.msk.f32.mxu1 %vm617_vm6, %v698_v40 }
 0x103   :  { %v708_v41 = vsel %vm153_vm2, %v705_v54, %v707_v33  ;;  %v713_v31 = vsel %vm153_vm2, %v707_v33, 0.0  ;;  %v688_v30 = vsel %vm112_vm0, %v685_v28, %v687_v24  ;;  %v2753_v28 = vld [vmem:[%s3927_s1 + $0x80] sm:$0xff] }
 0x104   :  { %v720_v34 = vmul.f32 %v3585_v47, %v708_v41  ;;  %v721_v46 = vmul.f32 %v3588_v51, %v713_v31  ;;  %v701_v54 = vmul.f32 %v3597_v44, %v688_v30  ;;  %3019 = vmatprep.subr.mxu0 %v2753_v28  ;;  %v2750_v30 = vld [vmem:[%s3929_s2 + $0x1] ss:$0 sm:$0xff] }
 0x105   :  { %2994 = vmatmul.mubr.msk.f32.vlgmr.msra.gmra.mxu1 %vm617_vm6, %v699_v10  ;;  %3020 = vmatpush3.msra.mxu0 %v2753_v28 }
 0x106   :  { %2996 = vmatprep.mubr.msk.f32.mxu1 %vm617_vm6, %v700_v6  ;;  %3006 = vmatprep.mubr.msk.f32.mxu0 %vm617_vm6, %v720_v34  ;;  %v1051_v6 = vmul.f32 0.125, %v3224_v18 }
 0x107   :  { %3007 = vmatmul.mubr.msk.f32.gmra.mxu0 %vm617_vm6, %v721_v46  ;;  %3010 = vmatpush3.msra.mxu1 %v2752_v20  ;;  %v3618_v46 = vld [vmem:[%s3927_s1 + $0x60] sm:$0xff]  ;;  %v1052_v20 = vfloor.f32 %v1050_v17 }
 0x108   :  { %3014 = vmatprep.subr.mxu1 %v3618_v46  ;;  %v1053_v45 = vfloor.f32 %v1051_v6 }
 0x109   :  { %2997 = vmatmul.mubr.msk.f32.gmra.mxu1 %vm617_vm6, %v701_v54  ;;  %v1054_v1 = vmul.f32 8.0, %v1052_v20 }
 0x1b1   :  { %v2985_v34 = vpop.f32.mrf.mxu1 }
 0x1b3   :  { %v806_v49 = vpop.f32.mrf.mxu1 }
 0x1bc   :  { %v3005_v24 = vpop.f32.mrf.mxu0 }
 0x1be   :  { %v1000_v10 = vpop.f32.mrf.mxu0 }
 0x1c1   :  { %v2988_v40 = vpop.f32.mrf.mxu1 }
 0x1c3   :  { %v816_v33 = vpop.f32.mrf.mxu1 }
 0x1c5   :  { %v2995_v41 = vpop.f32.mrf.mxu1 }
 0x1c6   :  { %v909_v31 = vadd.f32 %v2995_v41, %v2985_v34 }
 0x1c7   :  { %v903_v54 = vpop.f32.mrf.mxu1  ;;  %v3008_v11 = vpop.f32.mrf.mxu0 }
 0x1c8   :  { %v1020_v28 = vadd.f32 %v3005_v24, %v909_v31  ;;  %v904_v27 = vadd.f32 %v903_v54, %v806_v49  ;;  %v1055_v49 = vmul.f32 8.0, %v1053_v45  ;;  %v1056_v31 = vsub.f32 %v3198_v9, %v1054_v1 }
 0x1c9   :  { %v2998_v52 = vpop.f32.mrf.mxu1  ;;  %v1010_v8 = vpop.f32.mrf.mxu0 }
 0x1ca   :  { %v1028_v38 = vadd.f32 %v2750_v30, %v1020_v28  ;;  %v1019_v42 = vadd.f32 %v1000_v10, %v904_v27  ;;  %v919_v5 = vadd.f32 %v2998_v52, %v2988_v40  ;;  %vm1058_vm3 = vcmp.lt.f32.partialorder %v1056_v31, 0.5 }
 0x1cb   :  { %v913_v61 = vpop.f32.mrf.mxu1  ;;  %vm1062_vm5 = vcmp.gt.f32.partialorder %v1056_v31, 6.5 }
 0x1cc   :  { %v1032_v34 = vmax.f32 %v1028_v38, 0.0  ;;  %v1027_v41 = vadd.f32 %v2750_v30, %v1019_v42  ;;  %v1022_v57 = vadd.f32 %v3008_v11, %v919_v5  ;;  %v914_v14 = vadd.f32 %v913_v61, %v816_v33 }
 0x1cd   :  { %v1057_v38 = vsub.f32 %v3224_v18, %v1055_v49  ;;  %v3633_v61 = vsel %vm1058_vm3, 1.0, %v3146_v55  ;;  %v3643_v1 = vsel %vm1062_vm5, 1.0, %v3146_v55 }
 0x1ce   :  { %1037 = vst.msk [vmem:[#allocation3 + $0x8] sm:$0xff] %vm1035_vm15, %v1032_v34  ;;  %v1031_v60 = vmax.f32 %v1027_v41, 0.0  ;;  %v1030_v17 = vadd.f32 %v2750_v30, %v1022_v57  ;;  %v1021_v24 = vadd.f32 %v1010_v8, %v914_v14  ;;  %v3654_v54 = vsub.f32 1.0, %v3643_v1 }
 0x1cf   :  { %vm1059_vm4 = vcmp.lt.f32.partialorder %v1057_v38, 0.5  ;;  %vm1063_vm7 = vcmp.gt.f32.partialorder %v1057_v38, 6.5  ;;  %v3682_v38 = vld [vmem:[%s3927_s1 + $0xb0] sm:$0xf] }
 0x1d0   :  { %1036 = vst.msk [vmem:[#allocation3] sm:$0xff] %vm1035_vm15, %v1031_v60  ;;  %v1034_v52 = vmax.f32 %v1030_v17, 0.0  ;;  %v1029_v27 = vadd.f32 %v2750_v30, %v1021_v24  ;;  %v3636_v60 = vsub.f32 1.0, %v3633_v61  ;;  %v3640_v18 = vsel %vm1059_vm4, 1.0, %v3146_v55 }
 0x1d1   :  { %v3646_v11 = vsel %vm1063_vm7, 1.0, %v3146_v55  ;;  %v3651_v30 = vsub.f32 1.0, %v3640_v18 }
 0x1d2   :  { %1039 = vst.msk [vmem:[#allocation3 + $0x18] sm:$0xff] %vm1035_vm15, %v1034_v52  ;;  %v1033_v40 = vmax.f32 %v1029_v27, 0.0  ;;  %v3657_v20 = vsub.f32 1.0, %v3646_v11 }
 0x1d4   :  { %1038 = vst.msk [vmem:[#allocation3 + $0x10] sm:$0xff] %vm1035_vm15, %v1033_v40  ;;  %v2761_v40 = vld [vmem:[%s3927_s1 + $0x90] sm:$0xf] }
 0x1d5   :  { %3029 = vmatprep.subr.msk.mxu0 %vm1416_vm8, %v2761_v40 }
 0x1d7   :  { %v1040_v5 = vld [vmem:[#allocation3] ss:$2 sm:$0xff]  ;;  %v1044_v8 = vld [vmem:[#allocation3 + $0x1] ss:$2 sm:$0xff] }
 0x1d8   :  { %v1047_v14 = vmax.f32 %v1040_v5, %v1044_v8 }
 0x1da   :  { %3011 = vmatprep.mubr.msk.f32.mxu1 %vm1035_vm15, %v1047_v14  ;;  %v1068_v57 = vrot.slane %v1047_v14, 7  ;;  %v1078_v28 = vrot.slane %v1047_v14, 1  ;;  %v1354_v14 = vmul.f32 0.25, %v3198_v9 }
 0x1db   :  { %v1042_v45 = vld [vmem:[#allocation3 + $0x10] ss:$2 sm:$0xff]  ;;  %v1046_v42 = vld [vmem:[#allocation3 + $0x11] ss:$2 sm:$0xff] }
 0x1dc   :  { %v1048_v33 = vmax.f32 %v1042_v45, %v1046_v42  ;;  %v1073_v10 = vsel %vm112_vm0, 0.0, %v1068_v57 }
 0x1dd   :  { %v1076_v6 = vmul.f32 %v3636_v60, %v1073_v10 }
 0x1de   :  { %3012 = vmatmul.mubr.msk.f32.vlgmr.msra.gmra.mxu1 %vm1035_vm15, %v1048_v33  ;;  %v1069_v34 = vrot.slane %v1048_v33, 7  ;;  %v1079_v41 = vrot.slane %v1048_v33, 1  ;;  %v2760_v33 = vld [vmem:[%s3929_s2 + $0x2] ss:$0 sm:$0xff] }
 0x1df   :  { %3015 = vmatpush3.msra.mxu1 %v3618_v46  ;;  %3016 = vmatprep.mubr.msk.f32.mxu1 %vm1035_vm15, %v1076_v6  ;;  %v2762_v46 = vld [vmem:[%s3927_s1 + $0xa0] sm:$0xf]  ;;  %v1355_v6 = vfloor.f32 %v1354_v14 }
 0x1e0   :  { %v1070_v17 = vsel %vm112_vm0, %v1068_v57, %v1069_v34  ;;  %v1080_v24 = vsel %vm153_vm2, %v1078_v28, %v1079_v41  ;;  %v1083_v49 = vsel %vm153_vm2, %v1079_v41, 0.0  ;;  %3024 = vmatprep.subr.msk.mxu1 %vm1416_vm8, %v2762_v46 }
 0x1e1   :  { %v1077_v31 = vmul.f32 %v3651_v30, %v1070_v17  ;;  %v1086_v52 = vmul.f32 %v3654_v54, %v1080_v24  ;;  %v1087_v27 = vmul.f32 %v3657_v20, %v1083_v49  ;;  %v1356_v49 = vmul.f32 4.0, %v1355_v6 }
 0x1e3   :  { %3017 = vmatmul.mubr.msk.f32.vlgmr.msra.gmra.mxu1 %vm1035_vm15, %v1077_v31  ;;  %3021 = vmatprep.mubr.msk.f32.mxu0 %vm1035_vm15, %v1086_v52 }
 0x1e4   :  { %3022 = vmatmul.mubr.msk.f32.vlgmr.msra.gmra.mxu0 %vm1035_vm15, %v1087_v27  ;;  %3025 = vmatpush3.msk.msra.mxu1 %vm1416_vm8, %v2762_v46  ;;  %v1357_v46 = vsub.f32 %v3198_v9, %v1356_v49 }
 0x1e5   :  { %3034 = vmatprep.subr.msk.mxu1 %vm1416_vm8, %v3682_v38  ;;  %3030 = vmatpush3.msk.msra.mxu0 %vm1416_vm8, %v2761_v40 }
 0x1e6   :  { %vm1358_vm10 = vcmp.lt.f32.partialorder %v1357_v46, 0.5  ;;  %vm1360_vm11 = vcmp.gt.f32.partialorder %v1357_v46, 2.5 }
 0x1e7   :  { %v1359_v40 = vsel %vm1358_vm10, 1.0, %v3146_v55 }
 0x29e   :  { %v3013_v5 = vpop.f32.mrf.mxu1 }
 0x2a0   :  { %v1165_v8 = vpop.f32.mrf.mxu1 }
 0x2a3   :  { %v3018_v57 = vpop.f32.mrf.mxu1 }
 0x2a4   :  { %v1252_v45 = vadd.f32 %v3018_v57, %v3013_v5  ;;  %v3023_v42 = vpop.f32.mrf.mxu0  ;;  %v1361_v5 = vsel %vm1360_vm11, 1.0, %v3146_v55 }
 0x2a5   :  { %v1246_v10 = vpop.f32.mrf.mxu1 }
 0x2a6   :  { %v1337_v28 = vadd.f32 %v3023_v42, %v1252_v45  ;;  %v1247_v34 = vadd.f32 %v1246_v10, %v1165_v8  ;;  %v1327_v41 = vpop.f32.mrf.mxu0  ;;  %v1366_v45 = vsub.f32 1.0, %v1359_v40  ;;  %v1371_v42 = vsub.f32 1.0, %v1361_v5 }
 0x2a8   :  { %v1343_v17 = vadd.f32 %v2760_v33, %v1337_v28  ;;  %v1336_v24 = vadd.f32 %v1327_v41, %v1247_v34 }
 0x2aa   :  { %v1345_v31 = vmax.f32 %v1343_v17, 0.0  ;;  %v1342_v52 = vadd.f32 %v2760_v33, %v1336_v24 }
 0x2ac   :  { %1348 = vst.msk [vmem:[#allocation4 + $0x8] sm:$0xff] %vm1346_vm9, %v1345_v31  ;;  %v1344_v27 = vmax.f32 %v1342_v52, 0.0 }
 0x2ae   :  { %1347 = vst.msk [vmem:[#allocation4] sm:$0xff] %vm1346_vm9, %v1344_v27 }
 0x2b5   :  { %v1349_v8 = vld [vmem:[#allocation4] ss:$2 sm:$0xff]  ;;  %v1351_v14 = vld [vmem:[#allocation4 + $0x1] ss:$2 sm:$0xff] }
 0x2b6   :  { %v1352_v57 = vmax.f32 %v1349_v8, %v1351_v14 }
 0x2b8   :  { %v1363_v10 = vrot.slane %v1352_v57, 7  ;;  %v1368_v33 = vrot.slane %v1352_v57, 1  ;;  %v1373_v41 = vmul.f32 %v1359_v40, %v1352_v57  ;;  %v1375_v17 = vmul.f32 %v1361_v5, %v1352_v57 }
 0x2b9   :  { %v1377_v31 = vmul.f32 0.75, %v1352_v57 }
 0x2ba   :  { %v1365_v6 = vsel %vm112_vm0, 0.0, %v1363_v10  ;;  %v1370_v28 = vsel %vm153_vm2, %v1368_v33, 0.0 }
 0x2bb   :  { %v1367_v9 = vmul.f32 %v1366_v45, %v1365_v6  ;;  %v1372_v34 = vmul.f32 %v1371_v42, %v1370_v28 }
 0x2bd   :  { %v1374_v24 = vadd.f32 %v1373_v41, %v1367_v9  ;;  %v1376_v49 = vadd.f32 %v1375_v17, %v1372_v34 }
 0x2bf   :  { %v1378_v52 = vmul.f32 0.25, %v1374_v24  ;;  %v1381_v55 = vmul.f32 0.25, %v1376_v49 }
 0x2c1   :  { %v1379_v27 = vadd.f32 %v1378_v52, %v1377_v31  ;;  %v1382_v46 = vadd.f32 %v1381_v55, %v1377_v31  ;;  %v2773_v31 = vld [vmem:[%s3929_s2 + $0x3] ss:$0 sm:$0xff] }
 0x2c3   :  { %1380 = vst [vmem:[#allocation5] ss:$2 sm:$0xff] %v1379_v27  ;;  %1384 = vst [vmem:[#allocation5 + $0x1] ss:$2 sm:$0xff] %v1382_v46 }
 0x2ca   :  { %v1385_v8 = vld [vmem:[#allocation5] sm:$0xff]  ;;  %v1386_v14 = vld [vmem:[#allocation5 + $0x8] sm:$0xff] }
 0x2cb   :  { %v1389_v3 = vrot.slane %v1385_v8, 7  ;;  %v1397_v53 = vrot.slane %v1385_v8, 1  ;;  %3026 = vmatprep.mubr.msk.f32.mxu1 %vm1346_vm9, %v1385_v8  ;;  %v1390_v10 = vrot.slane %v1386_v14, 7  ;;  %v1398_v45 = vrot.slane %v1386_v14, 1 }
 0x2cc   :  { %3027 = vmatmul.mubr.msk.f32.vlgmr.msra.gmra.mxu1 %vm1346_vm9, %v1386_v14 }
 0x2cd   :  { %v1394_v40 = vsel %vm112_vm0, 0.0, %v1389_v3  ;;  %v1391_v5 = vsel %vm112_vm0, %v1389_v3, %v1390_v10  ;;  %v1402_v57 = vsel %vm153_vm2, %v1398_v45, 0.0  ;;  %3035 = vmatpush3.msk.msra.mxu1 %vm1416_vm8, %v3682_v38  ;;  %v1399_v42 = vsel %vm153_vm2, %v1397_v53, %v1398_v45  ;;  %v2775_v3 = vld [vmem:[%s3927_s1 + $0xd0] sm:$0xff]  ;;  %v3721_v53 = vld [vmem:[%s3927_s1 + $0xe0] sm:$0xff] }
 0x2ce   :  { %v1404_v33 = vmul.f32 %v1402_v57, %v3657_v20  ;;  %v1395_v6 = vmul.f32 %v1394_v40, %v3636_v60  ;;  %v1403_v28 = vmul.f32 %v1399_v42, %v3654_v54  ;;  %v1396_v9 = vmul.f32 %v1391_v5, %v3651_v30  ;;  %3039 = vmatprep.subr.mxu0 %v2775_v3  ;;  %v2774_v38 = vld [vmem:[%s3927_s1 + $0xc0] sm:$0xff] }
 0x2cf   :  { %3047 = vmatprep.subr.mxu1 %v2774_v38 }
 0x2d0   :  { %3031 = vmatprep.mubr.msk.f32.mxu0 %vm1346_vm9, %v1395_v6  ;;  %3036 = vmatprep.mubr.msk.f32.mxu1 %vm1346_vm9, %v1403_v28 }
 0x2d1   :  { %3032 = vmatmul.mubr.msk.f32.vlgmr.msra.gmra.mxu0 %vm1346_vm9, %v1396_v9  ;;  %3037 = vmatmul.mubr.msk.f32.vlgmr.msra.gmra.mxu1 %vm1346_vm9, %v1404_v33 }
 0x2d2   :  { %3040 = vmatpush3.msra.mxu0 %v2775_v3  ;;  %3048 = vmatpush3.msra.mxu1 %v2774_v38 }
 0x2d3   :  { %3055 = vmatprep.subr.mxu0 %v3721_v53 }
 0x38c   :  { %v3028_v34 = vpop.f32.mrf.mxu1 }
 0x38e   :  { %v1486_v41 = vpop.f32.mrf.mxu1 }
 0x391   :  { %v3033_v17 = vpop.f32.mrf.mxu0  ;;  %v3038_v24 = vpop.f32.mrf.mxu1 }
 0x392   :  { %v1576_v49 = vadd.f32 %v3033_v17, %v3028_v34 }
 0x393   :  { %v1570_v52 = vpop.f32.mrf.mxu0  ;;  %v1654_v46 = vpop.f32.mrf.mxu1 }
 0x394   :  { %v1664_v55 = vadd.f32 %v3038_v24, %v1576_v49  ;;  %v1571_v27 = vadd.f32 %v1570_v52, %v1486_v41 }
 0x396   :  { %v1670_v8 = vadd.f32 %v2773_v31, %v1664_v55  ;;  %v1663_v14 = vadd.f32 %v1654_v46, %v1571_v27 }
 0x398   :  { %v1672_v10 = vmax.f32 %v1670_v8, 0.0  ;;  %v1669_v45 = vadd.f32 %v2773_v31, %v1663_v14 }
 0x39a   :  { %v1684_v40 = vrot.slane %v1672_v10, 1  ;;  %v1671_v5 = vmax.f32 %v1669_v45, 0.0  ;;  %v1676_v57 = vrot.slane %v1672_v10, 7  ;;  %v1696_v6 = vmul.f32 %v1672_v10, %v3646_v11 }
 0x39b   :  { %v1692_v3 = vmul.f32 %v1672_v10, %v3640_v18  ;;  %v1700_v52 = vmul.f32 0.75, %v1672_v10 }
 0x39c   :  { %v1688_v42 = vsel %vm153_vm2, %v1684_v40, 0.0  ;;  %v1675_v28 = vrot.slane %v1671_v5, 7  ;;  %v1683_v9 = vrot.slane %v1671_v5, 1  ;;  %v1691_v38 = vmul.f32 %v1671_v5, %v3633_v61 }
 0x39d   :  { %v1690_v33 = vmul.f32 %v1688_v42, %v3657_v20  ;;  %v1695_v11 = vmul.f32 %v1671_v5, %v3643_v1  ;;  %v1699_v8 = vmul.f32 0.75, %v1671_v5 }
 0x39e   :  { %v1677_v41 = vsel %vm112_vm0, %v1675_v28, %v1676_v57  ;;  %v1680_v17 = vsel %vm112_vm0, 0.0, %v1675_v28  ;;  %v1685_v24 = vsel %vm153_vm2, %v1683_v9, %v1684_v40 }
 0x39f   :  { %v1698_v34 = vadd.f32 %v1696_v6, %v1690_v33  ;;  %v1681_v49 = vmul.f32 %v1680_v17, %v3636_v60  ;;  %v1682_v31 = vmul.f32 %v1677_v41, %v3651_v30  ;;  %v1689_v20 = vmul.f32 %v1685_v24, %v3654_v54 }
 0x3a1   :  { %v1709_v55 = vmul.f32 0.25, %v1698_v34  ;;  %v1693_v18 = vadd.f32 %v1691_v38, %v1681_v49  ;;  %v1694_v27 = vadd.f32 %v1692_v3, %v1682_v31  ;;  %v1697_v61 = vadd.f32 %v1695_v11, %v1689_v20 }
 0x3a3   :  { %v1711_v46 = vadd.f32 %v1709_v55, %v1700_v52  ;;  %v1701_v14 = vmul.f32 0.25, %v1693_v18  ;;  %v1702_v45 = vmul.f32 0.25, %v1694_v27  ;;  %v1708_v57 = vmul.f32 0.25, %v1697_v61 }
 0x3a5   :  { %1715 = vst [vmem:[#allocation6 + $0x11] ss:$2 sm:$0xff] %v1711_v46  ;;  %v1703_v40 = vadd.f32 %v1701_v14, %v1699_v8  ;;  %v1704_v42 = vadd.f32 %v1702_v45, %v1700_v52  ;;  %v1710_v60 = vadd.f32 %v1708_v57, %v1699_v8  ;;  %v2793_v45 = vld [vmem:[%s3927_s1 + $0x108] sm:$0xff]  ;;  %v2792_v57 = vld [vmem:[%s3927_s1 + $0x100] sm:$0xff] }
 0x3a6   :  { %3063 = vmatprep.subr.mxu1 %v2793_v45 }
 0x3a7   :  { %1705 = vst [vmem:[#allocation6] ss:$2 sm:$0xff] %v1703_v40  ;;  %1707 = vst [vmem:[#allocation6 + $0x10] ss:$2 sm:$0xff] %v1704_v42  ;;  %v3780_v40 = vld [vmem:[%s3927_s1 + $0x118] sm:$0xff] }
 0x3a8   :  { %1713 = vst [vmem:[#allocation6 + $0x1] ss:$2 sm:$0xff] %v1710_v60  ;;  %v2791_v42 = vld [vmem:[%s3927_s1 + $0xf8] sm:$0xff]  ;;  %v2790_v60 = vld [vmem:[%s3927_s1 + $0xf0] sm:$0xff] }
 0x3ae   :  { %v1718_v1 = vld [vmem:[#allocation6 + $0x10] sm:$0xff]  ;;  %v1719_v5 = vld [vmem:[#allocation6 + $0x18] sm:$0xff] }
 0x3af   :  { %v1716_v30 = vld [vmem:[#allocation6] sm:$0xff]  ;;  %v1717_v54 = vld [vmem:[#allocation6 + $0x8] sm:$0xff]  ;;  %v1727_v9 = vrot.slane %v1718_v1, 7  ;;  %v1743_v3 = vrot.slane %v1718_v1, 1  ;;  %v1729_v38 = vrot.slane %v1719_v5, 7  ;;  %v1745_v34 = vrot.slane %v1719_v5, 1 }
 0x3b0   :  { %v1724_v10 = vrot.slane %v1716_v30, 7  ;;  %v1740_v33 = vrot.slane %v1716_v30, 1  ;;  %3041 = vmatprep.mubr.msk.f32.mxu0 %vm1035_vm15, %v1716_v30  ;;  %v1725_v6 = vrot.slane %v1717_v54, 7  ;;  %v1741_v28 = vrot.slane %v1717_v54, 1 }
 0x3b1   :  { %3042 = vmatmul.mubr.msk.f32.vlgmr.msra.gmra.mxu0 %vm1035_vm15, %v1717_v54  ;;  %v1730_v55 = vsel %vm112_vm0, %v1727_v9, %v1729_v38  ;;  %v1746_v18 = vsel %vm153_vm2, %v1743_v3, %v1745_v34  ;;  %v1751_v61 = vsel %vm153_vm2, %v1745_v34, 0.0 }
 0x3b2   :  { %v1735_v41 = vsel %vm112_vm0, 0.0, %v1724_v10  ;;  %v1726_v17 = vsel %vm112_vm0, %v1724_v10, %v1725_v6  ;;  %3056 = vmatpush3.msra.mxu0 %v3721_v53  ;;  %3044 = vmatprep.mubr.msk.f32.mxu0 %vm1035_vm15, %v1718_v1  ;;  %v1742_v24 = vsel %vm153_vm2, %v1740_v33, %v1741_v28  ;;  %v1744_v20 = vsel %vm153_vm2, %v1741_v28, %v1743_v3 }
 0x3b3   :  { %v1736_v49 = vmul.f32 %v1735_v41, %v3556_v43  ;;  %v1737_v31 = vmul.f32 %v1726_v17, %v3574_v4  ;;  %v1752_v11 = vmul.f32 %v1742_v24, %v3523_v0  ;;  %v1728_v52 = vsel %vm112_vm0, %v1725_v6, %v1727_v9  ;;  %3079 = vmatprep.subr.mxu0 %v2791_v42  ;;  %v2789_v9 = vld [vmem:[%s3929_s2 + $0x4] ss:$0 sm:$0xff] }
 0x3b4   :  { %v1738_v53 = vmul.f32 %v1728_v52, %v3577_v16  ;;  %v1753_v27 = vmul.f32 %v1744_v20, %v3544_v32  ;;  %v1739_v46 = vmul.f32 %v1730_v55, %v3597_v44  ;;  %v1754_v8 = vmul.f32 %v1746_v18, %v3585_v47 }
 0x3b5   :  { %3045 = vmatmul.mubr.msk.f32.gmra.mxu0 %vm1035_vm15, %v1719_v5  ;;  %3049 = vmatprep.mubr.msk.f32.mxu1 %vm1035_vm15, %v1736_v49  ;;  %v1755_v14 = vmul.f32 %v1751_v61, %v3588_v51 }
 0x3b6   :  { %3050 = vmatmul.mubr.msk.f32.vlgmr.msra.gmra.mxu1 %vm1035_vm15, %v1737_v31  ;;  %3057 = vmatprep.mubr.msk.f32.mxu0 %vm1035_vm15, %v1752_v11 }
 0x3b7   :  { %3052 = vmatprep.mubr.msk.f32.mxu1 %vm1035_vm15, %v1738_v53  ;;  %3064 = vmatpush3.msra.mxu1 %v2793_v45 }
 0x3b8   :  { %3065 = vmatprep.subr.mxu1 %v2792_v57 }
 0x3b9   :  { %3058 = vmatmul.mubr.msk.f32.vlgmr.msra.gmra.mxu0 %vm1035_vm15, %v1753_v27  ;;  %3066 = vmatpush3.msra.mxu1 %v2792_v57 }
 0x3ba   :  { %3053 = vmatmul.mubr.msk.f32.gmra.mxu1 %vm1035_vm15, %v1739_v46  ;;  %3060 = vmatprep.mubr.msk.f32.mxu0 %vm1035_vm15, %v1754_v8 }
 0x3bb   :  { %3080 = vmatpush3.msra.mxu0 %v2791_v42  ;;  %3095 = vmatprep.subr.mxu1 %v3780_v40 }
 0x3bc   :  { %3081 = vmatprep.subr.mxu0 %v2790_v60 }
 0x3bd   :  { %3061 = vmatmul.mubr.msk.f32.gmra.mxu0 %vm1035_vm15, %v1755_v14 }
 0x3be   :  { %3082 = vmatpush3.msra.mxu0 %v2790_v60 }
 0x471   :  { %v3043_v30 = vpop.f32.mrf.mxu0 }
 0x473   :  { %v1837_v54 = vpop.f32.mrf.mxu0 }
 0x475   :  { %v3046_v1 = vpop.f32.mrf.mxu0 }
 0x476   :  { %v3051_v10 = vpop.f32.mrf.mxu1 }
 0x477   :  { %v1940_v33 = vadd.f32 %v3051_v10, %v3043_v30  ;;  %v1847_v6 = vpop.f32.mrf.mxu0 }
 0x478   :  { %v1934_v28 = vpop.f32.mrf.mxu1 }
 0x479   :  { %v1935_v5 = vadd.f32 %v1934_v28, %v1837_v54  ;;  %v3059_v3 = vpop.f32.mrf.mxu0 }
 0x47a   :  { %v2051_v38 = vadd.f32 %v3059_v3, %v1940_v33  ;;  %v3054_v34 = vpop.f32.mrf.mxu1 }
 0x47b   :  { %v1950_v41 = vadd.f32 %v3054_v34, %v3046_v1  ;;  %v2031_v17 = vpop.f32.mrf.mxu0 }
 0x47c   :  { %v2059_v24 = vadd.f32 %v2789_v9, %v2051_v38  ;;  %v2050_v49 = vadd.f32 %v2031_v17, %v1935_v5  ;;  %v1944_v31 = vpop.f32.mrf.mxu1 }
 0x47d   :  { %v1945_v20 = vadd.f32 %v1944_v31, %v1847_v6  ;;  %v3062_v11 = vpop.f32.mrf.mxu0 }
 0x47e   :  { %v2058_v52 = vadd.f32 %v2789_v9, %v2050_v49  ;;  %v2053_v53 = vadd.f32 %v3062_v11, %v1950_v41  ;;  %v2063_v55 = vmax.f32 %v2059_v24, 0.0 }
 0x47f   :  { %v2041_v18 = vpop.f32.mrf.mxu0 }
 0x480   :  { %v2062_v27 = vmax.f32 %v2058_v52, 0.0  ;;  %v2061_v61 = vadd.f32 %v2789_v9, %v2053_v53  ;;  %v2052_v46 = vadd.f32 %v2041_v18, %v1945_v20  ;;  %v2071_v8 = vrot.slane %v2063_v55, 7 }
 0x481   :  { %v2087_v14 = vrot.slane %v2063_v55, 1  ;;  %v2103_v42 = vmul.f32 %v2063_v55, %v3559_v25  ;;  %v2111_v25 = vmul.f32 %v2063_v55, %v3537_v39  ;;  %v2119_v38 = vmul.f32 0.75, %v2063_v55 }
 0x482   :  { %v2070_v45 = vrot.slane %v2062_v27, 7  ;;  %v2086_v57 = vrot.slane %v2062_v27, 1  ;;  %v2065_v60 = vmax.f32 %v2061_v61, 0.0  ;;  %v2060_v30 = vadd.f32 %v2789_v9, %v2052_v46 }
 0x483   :  { %v2102_v33 = vmul.f32 %v2062_v27, %v3550_v23  ;;  %v2110_v3 = vmul.f32 %v2062_v27, %v3516_v7  ;;  %v2118_v9 = vmul.f32 0.75, %v2062_v27 }
 0x484   :  { %v2072_v54 = vsel %vm112_vm0, %v2070_v45, %v2071_v8  ;;  %v2081_v1 = vsel %vm112_vm0, 0.0, %v2070_v45  ;;  %v2088_v10 = vsel %vm153_vm2, %v2086_v57, %v2087_v14  ;;  %v2091_v34 = vrot.slane %v2065_v60, 1 }
 0x485   :  { %v2082_v6 = vmul.f32 %v2081_v1, %v3556_v43  ;;  %v2083_v28 = vmul.f32 %v2072_v54, %v3574_v4  ;;  %v2098_v5 = vmul.f32 %v2088_v10, %v3523_v0  ;;  %v2064_v49 = vmax.f32 %v2060_v30, 0.0 }
 0x486   :  { %v2075_v31 = vrot.slane %v2065_v60, 7  ;;  %v2097_v23 = vsel %vm153_vm2, %v2091_v34, 0.0  ;;  %v2105_v43 = vmul.f32 %v2065_v60, %v3580_v48  ;;  %v2113_v4 = vmul.f32 %v2065_v60, %v3571_v21 }
 0x487   :  { %v2106_v41 = vadd.f32 %v2102_v33, %v2082_v6  ;;  %v2107_v17 = vadd.f32 %v2103_v42, %v2083_v28  ;;  %v2114_v24 = vadd.f32 %v2110_v3, %v2098_v5  ;;  %v2101_v7 = vmul.f32 %v2097_v23, %v3588_v51 }
 0x488   :  { %v2121_v39 = vmul.f32 0.75, %v2065_v60  ;;  %v2073_v52 = vrot.slane %v2064_v49, 7  ;;  %v2089_v53 = vrot.slane %v2064_v49, 1  ;;  %v2104_v55 = vmul.f32 %v2064_v49, %v3564_v13 }
 0x489   :  { %v2122_v20 = vmul.f32 0.25, %v2106_v41  ;;  %v2123_v0 = vmul.f32 0.25, %v2107_v17  ;;  %v2137_v11 = vmul.f32 0.25, %v2114_v24  ;;  %v2117_v46 = vadd.f32 %v2113_v4, %v2101_v7 }
 0x48a   :  { %v2074_v45 = vsel %vm112_vm0, %v2071_v8, %v2073_v52  ;;  %v2076_v48 = vsel %vm112_vm0, %v2073_v52, %v2075_v31  ;;  %v2090_v21 = vsel %vm153_vm2, %v2087_v14, %v2089_v53  ;;  %v2092_v57 = vsel %vm153_vm2, %v2089_v53, %v2091_v34 }
 0x48b   :  { %v2126_v18 = vadd.f32 %v2122_v20, %v2118_v9  ;;  %v2127_v27 = vadd.f32 %v2123_v0, %v2119_v38  ;;  %v2141_v61 = vadd.f32 %v2137_v11, %v2118_v9  ;;  %v2140_v51 = vmul.f32 0.25, %v2117_v46 }
 0x48c   :  { %v2084_v42 = vmul.f32 %v2074_v45, %v3577_v16  ;;  %v2085_v13 = vmul.f32 %v2076_v48, %v3597_v44  ;;  %v2099_v60 = vmul.f32 %v2090_v21, %v3544_v32  ;;  %v2100_v30 = vmul.f32 %v2092_v57, %v3585_v47 }
 0x48d   :  { %2130 = vst [vmem:[#allocation7] ss:$2 sm:$0xff] %v2126_v18  ;;  %2132 = vst [vmem:[#allocation7 + $0x10] ss:$2 sm:$0xff] %v2127_v27  ;;  %v2112_v8 = vmul.f32 %v2064_v49, %v3568_v37  ;;  %v2144_v54 = vadd.f32 %v2140_v51, %v2121_v39  ;;  %v2120_v6 = vmul.f32 0.75, %v2064_v49  ;;  %v3949_v49 = vsub.f32 1.0, %v3307_v62 }
 0x48e   :  { %2146 = vst [vmem:[#allocation7 + $0x1] ss:$2 sm:$0xff] %v2141_v61  ;;  %v2108_v1 = vadd.f32 %v2104_v55, %v2084_v42  ;;  %v2109_v10 = vadd.f32 %v2105_v43, %v2085_v13  ;;  %v2115_v14 = vadd.f32 %v2111_v25, %v2099_v60  ;;  %v2794_v25 = vld [vmem:[%s3927_s1 + $0x110] sm:$0xff]  ;;  %v3950_v23 = vsub.f32 1.0, %v3297_v56 }
 0x48f   :  { %v2116_v33 = vadd.f32 %v2112_v8, %v2100_v30  ;;  %2152 = vst [vmem:[#allocation7 + $0x31] ss:$2 sm:$0xff] %v2144_v54  ;;  %v3951_v61 = vsub.f32 1.0, %v3335_v19  ;;  %v3952_v57 = vsub.f32 1.0, %v3338_v29  ;;  %v3953_v60 = vsub.f32 1.0, %v3381_v15 }
 0x490   :  { %v2124_v28 = vmul.f32 0.25, %v2108_v1  ;;  %v2125_v5 = vmul.f32 0.25, %v2109_v10  ;;  %v2138_v3 = vmul.f32 0.25, %v2115_v14  ;;  %v3954_v10 = vsub.f32 1.0, %v3385_v58 }
 0x491   :  { %v2139_v9 = vmul.f32 0.25, %v2116_v33  ;;  %v3955_v15 = vsub.f32 1.0, %v3300_v59  ;;  %v3957_v58 = vsub.f32 1.0, %v3310_v63  ;;  %v3960_v63 = vsub.f32 1.0, %v3363_v22 }
 0x492   :  { %v2128_v16 = vadd.f32 %v2124_v28, %v2120_v6  ;;  %v2129_v34 = vadd.f32 %v2125_v5, %v2121_v39  ;;  %v2142_v44 = vadd.f32 %v2138_v3, %v2119_v38  ;;  %v3956_v28 = vsub.f32 1.0, %v3428_v35 }
 0x493   :  { %v2143_v41 = vadd.f32 %v2139_v9, %v2120_v6  ;;  %v3959_v35 = vsub.f32 1.0, %v3341_v36 }
 0x494   :  { %2134 = vst [vmem:[#allocation7 + $0x20] ss:$2 sm:$0xff] %v2128_v16  ;;  %2136 = vst [vmem:[#allocation7 + $0x30] ss:$2 sm:$0xff] %v2129_v34  ;;  %v3958_v34 = vsub.f32 1.0, %v3449_v50  ;;  %v3961_v50 = vsub.f32 1.0, %v3391_v2 }
 0x495   :  { %v2153_v32 = vld [vmem:[#allocation7] sm:$0xff]  ;;  %v2154_v17 = vld [vmem:[#allocation7 + $0x8] sm:$0xff]  ;;  %2148 = vst [vmem:[#allocation7 + $0x11] ss:$2 sm:$0xff] %v2142_v44  ;;  %2150 = vst [vmem:[#allocation7 + $0x21] ss:$2 sm:$0xff] %v2143_v41 }
 0x496   :  { %v2169_v37 = vrot.slane %v2153_v32, 7  ;;  %3067 = vmatprep.mubr.msk.f32.mxu1 %vm617_vm6, %v2153_v32  ;;  %v2170_v47 = vrot.slane %v2154_v17, 7  ;;  %v2201_v11 = vrot.slane %v2153_v32, 1  ;;  %v2202_v7 = vrot.slane %v2154_v17, 1  ;;  %v3964_v2 = vld [vmem:[#allocation8_spill] sm:$0xff] }
 0x497   :  { %3068 = vmatmul.mubr.msk.f32.vlgmr.msra.gmra.mxu1 %vm617_vm6, %v2154_v17 }
 0x498   :  { %v2192_v24 = vsel %vm112_vm0, 0.0, %v2169_v37  ;;  %v2171_v38 = vsel %vm112_vm0, %v2169_v37, %v2170_v47  ;;  %3096 = vmatpush3.msra.mxu1 %v3780_v40  ;;  %v2203_v42 = vsel %vm153_vm2, %v2201_v11, %v2202_v7 }
 0x499   :  { %v2194_v31 = vmul.f32 %v2171_v38, %v3949_v49  ;;  %v2193_v43 = vmul.f32 %v2192_v24, %v3950_v23  ;;  %3097 = vmatprep.subr.mxu1 %v2794_v25  ;;  %v2225_v33 = vmul.f32 %v2203_v42, %v3955_v15  ;;  %v3962_v38 = vsub.f32 1.0, %v3405_v12 }
 0x49a   :  { %3098 = vmatpush3.msra.mxu1 %v2794_v25  ;;  %v3963_v23 = vsub.f32 1.0, %v3434_v26 }
 0x49b   :  { %3083 = vmatprep.mubr.msk.f32.mxu0 %vm617_vm6, %v2193_v43  ;;  %v2159_v0 = vld [vmem:[#allocation7 + $0x30] sm:$0xff]  ;;  %v2160_v27 = vld [vmem:[#allocation7 + $0x38] sm:$0xff]  ;;  %v3965_v43 = vsub.f32 1.0, %v3964_v2 }
 0x49c   :  { %3084 = vmatmul.mubr.msk.f32.vlgmr.msra.gmra.mxu0 %vm617_vm6, %v2194_v31  ;;  %v2155_v4 = vld [vmem:[#allocation7 + $0x10] sm:$0xff]  ;;  %v2156_v20 = vld [vmem:[#allocation7 + $0x18] sm:$0xff]  ;;  %v2157_v62 = vld [vmem:[#allocation7 + $0x20] sm:$0xff]  ;;  %v2180_v18 = vrot.slane %v2159_v0, 7  ;;  %v2182_v19 = vrot.slane %v2160_v27, 7  ;;  %v2212_v59 = vrot.slane %v2159_v0, 1 }
 0x49d   :  { %v2172_v39 = vrot.slane %v2155_v4, 7  ;;  %3070 = vmatprep.mubr.msk.f32.mxu1 %vm617_vm6, %v2155_v4  ;;  %v2174_v40 = vrot.slane %v2156_v20, 7  ;;  %v2158_v52 = vld [vmem:[#allocation7 + $0x28] sm:$0xff]  ;;  %v2176_v56 = vrot.slane %v2157_v62, 7  ;;  %v2204_v21 = vrot.slane %v2155_v4, 1 }
 0x49e   :  { %3071 = vmatmul.mubr.msk.f32.gmra.mxu1 %vm617_vm6, %v2156_v20  ;;  %v2178_v53 = vrot.slane %v2158_v52, 7  ;;  %v2206_v13 = vrot.slane %v2156_v20, 1  ;;  %v2208_v1 = vrot.slane %v2157_v62, 1  ;;  %v2210_v6 = vrot.slane %v2158_v52, 1 }
 0x49f   :  { %3073 = vmatprep.mubr.msk.f32.mxu1 %vm617_vm6, %v2157_v62  ;;  %v2173_v55 = vsel %vm112_vm0, %v2170_v47, %v2172_v39  ;;  %v2175_v45 = vsel %vm112_vm0, %v2172_v39, %v2174_v40  ;;  %v2177_v48 = vsel %vm112_vm0, %v2174_v40, %v2176_v56  ;;  %v2205_v54 = vsel %vm153_vm2, %v2202_v7, %v2204_v21 }
 0x4a0   :  { %v2195_v46 = vmul.f32 %v2173_v55, %v3951_v61  ;;  %v2196_v51 = vmul.f32 %v2175_v45, %v3952_v57  ;;  %v2197_v30 = vmul.f32 %v2177_v48, %v3953_v60  ;;  %v2179_v8 = vsel %vm112_vm0, %v2176_v56, %v2178_v53 }
 0x4a1   :  { %v2181_v29 = vsel %vm112_vm0, %v2178_v53, %v2180_v18  ;;  %v2198_v14 = vmul.f32 %v2179_v8, %v3954_v10  ;;  %v2183_v3 = vsel %vm112_vm0, %v2180_v18, %v2182_v19  ;;  %v2207_v9 = vsel %vm153_vm2, %v2204_v21, %v2206_v13 }
 0x4a2   :  { %3074 = vmatmul.mubr.msk.f32.gmra.mxu1 %vm617_vm6, %v2158_v52  ;;  %3086 = vmatprep.mubr.msk.f32.mxu0 %vm617_vm6, %v2195_v46  ;;  %v2199_v5 = vmul.f32 %v2181_v29, %v3956_v28  ;;  %v2226_v16 = vmul.f32 %v2205_v54, %v3957_v58  ;;  %v2200_v44 = vmul.f32 %v2183_v3, %v3958_v34  ;;  %v2214_v17 = vrot.slane %v2160_v27, 1 }
 0x4a3   :  { %3076 = vmatprep.mubr.msk.f32.mxu1 %vm617_vm6, %v2159_v0  ;;  %3087 = vmatmul.mubr.msk.f32.gmra.mxu0 %vm617_vm6, %v2196_v51  ;;  %v2227_v41 = vmul.f32 %v2207_v9, %v3959_v35  ;;  %v2209_v32 = vsel %vm153_vm2, %v2206_v13, %v2208_v1  ;;  %v2211_v37 = vsel %vm153_vm2, %v2208_v1, %v2210_v6 }
 0x4a4   :  { %3089 = vmatprep.mubr.msk.f32.mxu0 %vm617_vm6, %v2197_v30  ;;  %v2228_v47 = vmul.f32 %v2209_v32, %v3960_v63  ;;  %v2229_v25 = vmul.f32 %v2211_v37, %v3961_v50  ;;  %v2213_v36 = vsel %vm153_vm2, %v2210_v6, %v2212_v59  ;;  %v2215_v24 = vsel %vm153_vm2, %v2212_v59, %v2214_v17 }
 0x4a5   :  { %v2230_v49 = vmul.f32 %v2213_v36, %v3962_v38  ;;  %v2224_v31 = vsel %vm153_vm2, %v2214_v17, 0.0  ;;  %v2231_v22 = vmul.f32 %v2215_v24, %v3963_v23 }
 0x4a6   :  { %3077 = vmatmul.mubr.msk.f32.gmra.mxu1 %vm617_vm6, %v2160_v27  ;;  %v2232_v4 = vmul.f32 %v2224_v31, %v3965_v43  ;;  %v2820_v27 = vld [vmem:[%s3929_s2 + $0x5] ss:$0 sm:$0xff] }
 0x4a7   :  { %3090 = vmatmul.mubr.msk.f32.gmra.mxu0 %vm617_vm6, %v2198_v14  ;;  %3099 = vmatprep.mubr.msk.f32.mxu1 %vm617_vm6, %v2225_v33 }
 0x4a8   :  { %3092 = vmatprep.mubr.msk.f32.mxu0 %vm617_vm6, %v2199_v5 }
 0x4aa   :  { %3100 = vmatmul.mubr.msk.f32.vlgmr.msra.gmra.mxu1 %vm617_vm6, %v2226_v16 }
 0x4ab   :  { %3093 = vmatmul.mubr.msk.f32.gmra.mxu0 %vm617_vm6, %v2200_v44  ;;  %3102 = vmatprep.mubr.msk.f32.mxu1 %vm617_vm6, %v2227_v41 }
 0x4ae   :  { %3103 = vmatmul.mubr.msk.f32.gmra.mxu1 %vm617_vm6, %v2228_v47 }
 0x4af   :  { %3105 = vmatprep.mubr.msk.f32.mxu1 %vm617_vm6, %v2229_v25 }
 0x4b2   :  { %3106 = vmatmul.mubr.msk.f32.gmra.mxu1 %vm617_vm6, %v2230_v49 }
 0x4b3   :  { %3108 = vmatprep.mubr.msk.f32.mxu1 %vm617_vm6, %v2231_v22 }
 0x4b6   :  { %3109 = vmatmul.mubr.msk.f32.gmra.mxu1 %vm617_vm6, %v2232_v4 }
 0x557   :  { %v3069_v20 = vpop.f32.mrf.mxu1 }
 0x559   :  { %v2325_v0 = vpop.f32.mrf.mxu1 }
 0x55c   :  { %v3085_v11 = vpop.f32.mrf.mxu0 }
 0x55d   :  { %v2460_v18 = vadd.f32 %v3085_v11, %v3069_v20 }
 0x55e   :  { %v3072_v7 = vpop.f32.mrf.mxu1  ;;  %v2454_v12 = vpop.f32.mrf.mxu0 }
 0x55f   :  { %v2455_v46 = vadd.f32 %v2454_v12, %v2325_v0 }
 0x560   :  { %v2335_v39 = vpop.f32.mrf.mxu1 }
 0x562   :  { %v3075_v40 = vpop.f32.mrf.mxu1 }
 0x563   :  { %v3088_v62 = vpop.f32.mrf.mxu0 }
 0x564   :  { %v2345_v52 = vpop.f32.mrf.mxu1  ;;  %v2470_v57 = vadd.f32 %v3088_v62, %v3072_v7 }
 0x565   :  { %v2464_v26 = vpop.f32.mrf.mxu0 }
 0x566   :  { %v3078_v56 = vpop.f32.mrf.mxu1  ;;  %v2465_v60 = vadd.f32 %v2464_v26, %v2335_v39 }
 0x567   :  { %v3091_v53 = vpop.f32.mrf.mxu0 }
 0x568   :  { %v2355_v55 = vpop.f32.mrf.mxu1  ;;  %v2480_v54 = vadd.f32 %v3091_v53, %v3075_v40 }
 0x569   :  { %v2474_v45 = vpop.f32.mrf.mxu0 }
 0x56a   :  { %v3101_v61 = vpop.f32.mrf.mxu1  ;;  %v2475_v33 = vadd.f32 %v2474_v45, %v2345_v52 }
 0x56b   :  { %v2623_v48 = vadd.f32 %v3101_v61, %v2460_v18  ;;  %v3094_v19 = vpop.f32.mrf.mxu0 }
 0x56c   :  { %v2583_v21 = vpop.f32.mrf.mxu1  ;;  %v2490_v58 = vadd.f32 %v3094_v19, %v3078_v56 }
 0x56d   :  { %v2635_v51 = vadd.f32 %v2820_v27, %v2623_v48  ;;  %v2622_v42 = vadd.f32 %v2583_v21, %v2455_v46  ;;  %v2484_v28 = vpop.f32.mrf.mxu0 }
 0x56e   :  { %v3104_v13 = vpop.f32.mrf.mxu1  ;;  %v2485_v35 = vadd.f32 %v2484_v28, %v2355_v55 }
 0x56f   :  { %v2822_v30 = vmul.f32 -1.442695, %v2635_v51  ;;  %v2634_v8 = vadd.f32 %v2820_v27, %v2622_v42  ;;  %v2625_v29 = vadd.f32 %v3104_v13, %v2470_v57 }
 0x570   :  { %v2593_v1 = vpop.f32.mrf.mxu1 }
 0x571   :  { %3114 = vpow2.f32 %v2822_v30  ;;  %v2821_v10 = vmul.f32 -1.442695, %v2634_v8  ;;  %v2637_v14 = vadd.f32 %v2820_v27, %v2625_v29  ;;  %v2624_v15 = vadd.f32 %v2593_v1, %v2465_v60 }
 0x572   :  { %v3107_v6 = vpop.f32.mrf.mxu1 }
 0x573   :  { %3116 = vpow2.f32 %v2821_v10  ;;  %v2824_v5 = vmul.f32 -1.442695, %v2637_v14  ;;  %v2636_v3 = vadd.f32 %v2820_v27, %v2624_v15  ;;  %v2627_v9 = vadd.f32 %v3107_v6, %v2480_v54 }
 0x574   :  { %v2603_v16 = vpop.f32.mrf.mxu1 }
 0x575   :  { %3118 = vpow2.f32 %v2824_v5  ;;  %v2823_v59 = vmul.f32 -1.442695, %v2636_v3  ;;  %v2639_v34 = vadd.f32 %v2820_v27, %v2627_v9  ;;  %v2626_v44 = vadd.f32 %v2603_v16, %v2475_v33 }
 0x576   :  { %v3110_v41 = vpop.f32.mrf.mxu1 }
 0x577   :  { %3120 = vpow2.f32 %v2823_v59  ;;  %v2826_v32 = vmul.f32 -1.442695, %v2639_v34  ;;  %v2638_v17 = vadd.f32 %v2820_v27, %v2626_v44  ;;  %v2629_v37 = vadd.f32 %v3110_v41, %v2490_v58 }
 0x578   :  { %v2613_v63 = vpop.f32.mrf.mxu1 }
 0x579   :  { %3122 = vpow2.f32 %v2826_v32  ;;  %v2825_v47 = vmul.f32 -1.442695, %v2638_v17  ;;  %v2641_v50 = vadd.f32 %v2820_v27, %v2629_v37  ;;  %v2628_v25 = vadd.f32 %v2613_v63, %v2485_v35 }
 0x57b   :  { %3124 = vpow2.f32 %v2825_v47  ;;  %v2828_v36 = vmul.f32 -1.442695, %v2641_v50  ;;  %v2640_v24 = vadd.f32 %v2820_v27, %v2628_v25 }
 0x57d   :  { %3126 = vpow2.f32 %v2828_v36  ;;  %v2827_v38 = vmul.f32 -1.442695, %v2640_v24 }
 0x57e   :  { %v3115_v49 = vpop.eup %3114 }
 0x57f   :  { %v2667_v31 = vadd.f32 1.0, %v3115_v49  ;;  %3128 = vpow2.f32 %v2827_v38 }
 0x580   :  { %v3117_v23 = vpop.eup %3116 }
 0x581   :  { %3130 = vrcp.f32 %v2667_v31  ;;  %v2666_v22 = vadd.f32 1.0, %v3117_v23 }
 0x582   :  { %v3119_v2 = vpop.eup %3118 }
 0x583   :  { %3132 = vrcp.f32 %v2666_v22  ;;  %v2669_v43 = vadd.f32 1.0, %v3119_v2 }
 0x584   :  { %v3121_v4 = vpop.eup %3120 }
 0x585   :  { %3134 = vrcp.f32 %v2669_v43  ;;  %v2668_v20 = vadd.f32 1.0, %v3121_v4 }
 0x586   :  { %v3123_v0 = vpop.eup %3122 }
 0x587   :  { %3136 = vrcp.f32 %v2668_v20  ;;  %v2671_v11 = vadd.f32 1.0, %v3123_v0 }
 0x588   :  { %v3125_v7 = vpop.eup %3124 }
 0x589   :  { %3138 = vrcp.f32 %v2671_v11  ;;  %v2670_v12 = vadd.f32 1.0, %v3125_v7 }
 0x58a   :  { %v3127_v39 = vpop.eup %3126 }
 0x58b   :  { %3140 = vrcp.f32 %v2670_v12  ;;  %v2673_v40 = vadd.f32 1.0, %v3127_v39 }
 0x58c   :  { %v3129_v62 = vpop.eup %3128 }
 0x58d   :  { %3142 = vrcp.f32 %v2673_v40  ;;  %v2672_v52 = vadd.f32 1.0, %v3129_v62 }
 0x58e   :  { %v3131_v26 = vpop.eup %3130 }
 0x58f   :  { %2691 = vst.msk [vmem:[%s3930_s3 + $0x8] sm:$0xff] %vm200_vm1, %v3131_v26  ;;  %3144 = vrcp.f32 %v2672_v52 }
 0x590   :  { %v3133_v56 = vpop.eup %3132 }
 0x591   :  { %2690 = vst.msk [vmem:[%s3930_s3] sm:$0xff] %vm200_vm1, %v3133_v56 }
 0x592   :  { %v3135_v53 = vpop.eup %3134 }
 0x593   :  { %2693 = vst.msk [vmem:[%s3930_s3 + $0x18] sm:$0xff] %vm200_vm1, %v3135_v53 }
 0x594   :  { %v3137_v55 = vpop.eup %3136 }
 0x595   :  { %2692 = vst.msk [vmem:[%s3930_s3 + $0x10] sm:$0xff] %vm200_vm1, %v3137_v55 }
 0x596   :  { %v3139_v18 = vpop.eup %3138 }
 0x597   :  { %2695 = vst.msk [vmem:[%s3930_s3 + $0x28] sm:$0xff] %vm200_vm1, %v3139_v18 }
 0x598   :  { %v3141_v27 = vpop.eup %3140 }
 0x599   :  { %2694 = vst.msk [vmem:[%s3930_s3 + $0x20] sm:$0xff] %vm200_vm1, %v3141_v27 }
 0x59a   :  { %v3143_v61 = vpop.eup %3142 }
 0x59b   :  { %2697 = vst.msk [vmem:[%s3930_s3 + $0x38] sm:$0xff] %vm200_vm1, %v3143_v61 }
 0x59c   :  { %v3145_v46 = vpop.eup %3144 }
 0x59d   :  { %2696 = vst.msk [vmem:[%s3930_s3 + $0x30] sm:$0xff] %vm200_vm1, %v3145_v46 }

</bundles_post_ra>
